<compile_context>
chip_gen: v7x
topology: tpu7x:2x2x1
jax: 0.10.0
libtpu: 0.0.40
codegen_flags: <defaults>
</compile_context>

<pallas_src>
import functools
import numpy as np
import jax
import jax.numpy as jnp
from jax import lax
from jax.experimental import pallas as pl
from jax.experimental.pallas import tpu as pltpu


def _layernorm(v, g, b, eps=1e-5):
    # Two-pass centered statistics (safer than E[x^2]-E[x]^2 for large means).
    mu = jnp.mean(v, axis=-1, keepdims=True)
    c = v - mu
    var = jnp.mean(c * c, axis=-1, keepdims=True)
    return c * lax.rsqrt(var + eps) * g + b


def encoder_layer_kernel(x_ref, bias_ref, wq_ref, wfc_ref,
                         g1_ref, bt1_ref, w1_ref, b1_ref, w2_ref, b2_ref,
                         g2_ref, bt2_ref, *rest,
                         n_heads, d_k, tq, emit_attn, compute_dtype):
    if emit_attn:
        out_ref, attn_ref, p_ref, kt_ref = rest
    else:
        out_ref, p_ref, kt_ref = rest
        attn_ref = None

    qi = pl.program_id(1)
    cd = compute_dtype

    # ---- Shared projection K = V = Q = x @ W_Q^T (reference-module semantics),
    # computed once per batch element (query axis stays sequential / "arbitrary"):
    #   * one full-width (S, D) x (D, H*d_k) matmul -> lane-dense packed p_ref,
    #   * kt_ref[h] holds (1/sqrt(d_k)) * K_h^T as (d_k, S): lane dim = S (dense), so
    #     the per-tile scores matmul needs no implicit transpose.
    @pl.when(qi == 0)
    def _():
        x_b = x_ref[0].astype(cd)                                        # (S, D)
        p = jnp.dot(x_b, wq_ref[...],
                    preferred_element_type=jnp.float32)                  # (S, H*d_k) f32
        p_ref[...] = p.astype(cd)
        # Fold 1/sqrt(d_k) into K only (scores scale; V/Q stay unscaled).
        kt = (p * jnp.float32(1.0 / np.sqrt(d_k))).T.astype(cd)          # (H*d_k, S)
        for h in range(n_heads):
            kt_ref[h] = kt[h * d_k:(h + 1) * d_k, :]

    q_start = pl.multiple_of(qi * tq, tq)
    q_tile = p_ref[pl.ds(q_start, tq), :]                                # (TQ, H*d_k)
    bias = bias_ref[0].astype(jnp.float32)                               # (TQ, S) additive mask

    # ---- Attention, head by head (static unroll; identical MXU sequence to a
    # head-batched einsum, but with lane-dense (d_k, S) RHS tiles for the scores).
    ctx = []
    for h in range(n_heads):
        hs = h * d_k
        q_h = q_tile[:, hs:hs + d_k]                                     # (TQ, d_k) cd
        s_h = jnp.dot(q_h, kt_ref[h],
                      preferred_element_type=jnp.float32) + bias         # (TQ, S) f32
        m_h = jnp.max(s_h, axis=-1, keepdims=True)
        e_h = jnp.exp(s_h - m_h)
        attn_h = e_h * pl.reciprocal(jnp.sum(e_h, axis=-1, keepdims=True),
                                     approx=True)
        if emit_attn:
            attn_ref[0, h] = attn_h.astype(attn_ref.dtype)
        v_h = p_ref[:, hs:hs + d_k]                                      # (S, d_k); V == K (ref. bug)
        ctx.append(jnp.dot(attn_h.astype(cd), v_h,
                           preferred_element_type=jnp.float32))          # (TQ, d_k) f32

    # ---- Head merge + output projection as ONE deep matmul (contraction H*d_k = D)
    # instead of H shallow (depth d_k) matmuls chained through an accumulator.
    ctx_packed = jnp.concatenate(ctx, axis=-1).astype(cd)                # (TQ, H*d_k)
    mha = jnp.dot(ctx_packed, wfc_ref[...],
                  preferred_element_type=jnp.float32)                    # (TQ, D) f32

    x_q = x_ref[0, pl.ds(q_start, tq), :]                                # (TQ, D) f32 residual
    a = _layernorm(x_q + mha, g1_ref[...], bt1_ref[...])                 # (TQ, D) f32

    # ---- Position-wise feed-forward (weights pre-transposed; cd operands, f32 acc).
    h1 = jnp.dot(a.astype(cd), w1_ref[...],
                 preferred_element_type=jnp.float32) + b1_ref[...]
    h1 = jnp.maximum(h1, 0.0)
    h2 = jnp.dot(h1.astype(cd), w2_ref[...],
                 preferred_element_type=jnp.float32) + b2_ref[...]

    out_ref[0] = _layernorm(h2 + a, g2_ref[...], bt2_ref[...]).astype(out_ref.dtype)


def _vmem_estimate(*, S, D, dff, H, tq, cd_itemsize, attn_itemsize,
                   emit_attn, weight_buffers):
    f32 = 4
    est = 2 * S * D * f32                     # x block (double-buffered, full sequence)
    est += 2 * tq * S * cd_itemsize           # additive-mask bias tile
    est += 2 * tq * D * f32                   # output tile
    if emit_attn:
        est += 2 * H * tq * S * attn_itemsize # attention-weights tile
    est += weight_buffers * cd_itemsize * (2 * D * D + 2 * D * dff)   # wq, wfc, w1, w2
    est += weight_buffers * f32 * (5 * D + dff)                       # LN params + biases
    est += 2 * S * D * cd_itemsize            # p_ref + kt_ref scratches
    est += 4 * H * tq * S * f32               # scores / exp / attn live values
    est += tq * dff * (f32 + cd_itemsize)     # FFN hidden (+ cd copy)
    est += 8 * tq * D * f32                   # ctx / mha / residual / LN temporaries
    return est


def encoder_layer(x, mask, params, *, n_heads, compute_dtype=jnp.bfloat16,
                  attn_dtype=None, return_attn=True, tq=None):
    B, S, D = x.shape
    assert D % n_heads == 0
    d_k = D // n_heads
    dff = params["w1"].shape[0]
    cd = jnp.dtype(compute_dtype)
    attn_dtype = cd if attn_dtype is None else jnp.dtype(attn_dtype)

    if tq is None:
        tq = min(128, S)
    assert S % tq == 0 and (tq == S or tq % 8 == 0), \
        "query tile must divide S and be a multiple of 8"

    # Derive the query tile from the chip's VMEM capacity (not just a post-hoc clamp).
    try:
        vmem_cap = int(getattr(pltpu.get_tpu_info(), "vmem_capacity_bytes",
                               64 * 1024 * 1024))
    except Exception:
        vmem_cap = 64 * 1024 * 1024
    budget = int(0.7 * vmem_cap)

    def estimate(t):
        return _vmem_estimate(S=S, D=D, dff=dff, H=n_heads, tq=t,
                              cd_itemsize=cd.itemsize,
                              attn_itemsize=attn_dtype.itemsize,
                              emit_attn=return_attn, weight_buffers=2)

    while estimate(tq) > budget and tq % 16 == 0:
        tq //= 2
    nq = S // tq
    est = estimate(tq)
    vmem_limit = int(min(0.9 * vmem_cap, max(2 * est, 32 * 1024 * 1024)))

    # Weights pre-transposed and cast in the wrapper: all matmuls see `compute_dtype`
    # operands (bf16 -> native MXU rate, half the weight VMEM/HBM traffic) + f32 acc.
    wq_p = jnp.asarray(params["wq"]).T.astype(cd)       # (D, H*d_k)
    wfc_p = jnp.asarray(params["wfc"]).T.astype(cd)     # (H*d_k, D)
    w1_t = jnp.asarray(params["w1"]).T.astype(cd)       # (D, dff)
    w2_t = jnp.asarray(params["w2"]).T.astype(cd)       # (dff, D)
    b1 = jnp.asarray(params["b1"], jnp.float32).reshape(1, dff)
    b2 = jnp.asarray(params["b2"], jnp.float32).reshape(1, D)
    g1 = jnp.asarray(params["g1"], jnp.float32).reshape(1, D)
    bt1 = jnp.asarray(params["bt1"], jnp.float32).reshape(1, D)
    g2 = jnp.asarray(params["g2"], jnp.float32).reshape(1, D)
    bt2 = jnp.asarray(params["bt2"], jnp.float32).reshape(1, D)
    # Additive mask bias (replaces in-kernel compare + select; halves mask DMA in bf16).
    bias = (jnp.asarray(mask, jnp.float32) * jnp.float32(-10000.0)).astype(cd)

    kernel = functools.partial(encoder_layer_kernel, n_heads=n_heads, d_k=d_k,
                               tq=tq, emit_attn=return_attn, compute_dtype=cd)

    def build(constant_mode):
        def const_spec(arr):
            shape, n = arr.shape, arr.ndim
            kw = {} if constant_mode is None else dict(pipeline_mode=constant_mode)
            return pl.BlockSpec(shape, lambda b, q, _n=n: (0,) * _n, **kw)

        in_specs = [
            pl.BlockSpec((1, S, D), lambda b, q: (b, 0, 0)),       # x (full seq per batch elem)
            pl.BlockSpec((1, tq, S), lambda b, q: (b, q, 0)),      # additive mask bias tile
            const_spec(wq_p), const_spec(wfc_p),
            const_spec(g1), const_spec(bt1),
            const_spec(w1_t), const_spec(b1),
            const_spec(w2_t), const_spec(b2),
            const_spec(g2), const_spec(bt2),
        ]
        out_spec_out = pl.BlockSpec((1, tq, D), lambda b, q: (b, q, 0))
        if return_attn:
            out_specs = [out_spec_out,
                         pl.BlockSpec((1, n_heads, tq, S), lambda b, q: (b, 0, q, 0))]
            out_shape = (jax.ShapeDtypeStruct((B, S, D), jnp.float32),
                         jax.ShapeDtypeStruct((B, n_heads, S, S), attn_dtype))
        else:
            out_specs = out_spec_out
            out_shape = jax.ShapeDtypeStruct((B, S, D), jnp.float32)

        grid_spec = pltpu.PrefetchScalarGridSpec(
            num_scalar_prefetch=0, grid=(B, nq),
            in_specs=in_specs, out_specs=out_specs,
            scratch_shapes=[pltpu.VMEM((S, D), cd),                # packed Q/K/V projection
                            pltpu.VMEM((n_heads, d_k, S), cd)])    # lane-dense per-head K^T

        return pl.pallas_call(
            kernel, out_shape=out_shape, grid_spec=grid_spec,
            compiler_params=pltpu.CompilerParams(
                # Batch axis "parallel" (megacore-shardable); the query axis must stay
                # sequential because the per-batch projection scratch is reused across
                # query tiles (see module TODO for the v7x two-core restructure).
                dimension_semantics=("parallel", "arbitrary"),
                vmem_limit_bytes=vmem_limit),
        )

    args = (x, bias, wq_p, wfc_p, g1, bt1, w1_t, b1, w2_t, b2, g2, bt2)
    try:
        # Constant-index weight blocks: request single buffering (halves their VMEM
        # residency - matters most inside v7x's 64 MiB VMEM).
        return build(pl.Buffered(1))(*args)
    except Exception:
        # Fallback for Pallas versions that reject pipeline_mode / Buffered(1).
        return build(None)(*args)


def ref_encoder_layer(x, mask, params, *, n_heads):
    """Pure-JAX f32 reference mirroring the PyTorch forward semantics."""
    B, S, D = x.shape
    d_k = D // n_heads
    Q = x @ params["wq"].T
    K, V = Q, Q
    Qh = Q.reshape(B, S, n_heads, d_k).transpose(0, 2, 1, 3)
    Kh = K.reshape(B, S, n_heads, d_k).transpose(0, 2, 1, 3)
    Vh = V.reshape(B, S, n_heads, d_k).transpose(0, 2, 1, 3)
    scores = jnp.einsum("bhqd,bhkd->bhqk", Qh, Kh) / np.sqrt(d_k)
    m = (mask > 0.5)[:, None, :, :]
    scores = jnp.where(m, -10000.0, scores)
    attn = jax.nn.softmax(scores, axis=-1)
    out = jnp.einsum("bhqk,bhkd->bhqd", attn, Vh)
    out = out.transpose(0, 2, 1, 3).reshape(B, S, n_heads * d_k)
    out = out @ params["wfc"].T

    def ln(v, g, b):
        mu = v.mean(-1, keepdims=True)
        var = ((v - mu) ** 2).mean(-1, keepdims=True)
        return (v - mu) / jnp.sqrt(var + 1e-5) * g + b

    a = ln(x + out, params["g1"], params["bt1"])
    h = jnp.maximum(a @ params["w1"].T + params["b1"], 0.0)
    h = h @ params["w2"].T + params["b2"]
    return ln(h + a, params["g2"], params["bt2"]), attn


def _make_params(key, d_model, n_heads, dff):
    d_k = d_model // n_heads
    ks = jax.random.split(key, 6)
    std_qk = np.sqrt(2.0 / (d_model + d_k))
    return {
        "wq":  (jax.random.normal(ks[0], (n_heads * d_k, d_model)) * std_qk).astype(jnp.float32),
        "wfc": (jax.random.normal(ks[1], (d_model, n_heads * d_k)) * std_qk).astype(jnp.float32),
        "g1":  jnp.ones((d_model,), jnp.float32),
        "bt1": jnp.zeros((d_model,), jnp.float32),
        "w1":  (jax.random.normal(ks[2], (dff, d_model)) * 0.1).astype(jnp.float32),
        "b1":  (jax.random.normal(ks[3], (dff,)) * 0.1).astype(jnp.float32),
        "w2":  (jax.random.normal(ks[4], (d_model, dff)) * 0.1).astype(jnp.float32),
        "b2":  (jax.random.normal(ks[5], (d_model,)) * 0.1).astype(jnp.float32),
        "g2":  jnp.ones((d_model,), jnp.float32),
        "bt2": jnp.zeros((d_model,), jnp.float32),
    }


if __name__ == "__main__":
    key = jax.random.PRNGKey(0)

    # (B, S, d_model, n_heads, dff, tq) - the second config exercises the multi-tile
    # query grid (nq = 2) and the per-batch projection scratch reuse.
    configs = [
        (2, 8, 32, 4, 64, None),   # single query tile per batch element
        (2, 32, 32, 4, 64, 16),    # two query tiles per batch element
    ]

    out_bf16 = None
    for B, S, d_model, n_heads, dff, tq in configs:
        key, kp, kx = jax.random.split(key, 3)
        params = _make_params(kp, d_model, n_heads, dff)

        x = jax.random.normal(kx, (B, S, d_model), jnp.float32)
        # mask: 1.0 == masked (padding positions); mask the trailing keys of batch 1
        mask = jnp.zeros((B, S, S), jnp.float32)
        mask = mask.at[1, :, S - max(2, S // 8):].set(1.0)

        out_ref_, attn_ref_ = ref_encoder_layer(x, mask, params, n_heads=n_heads)

        # --- bf16 MXU-operand path (the performance configuration): looser tolerances
        # against the f32 reference are expected for bf16 operands.
        out_bf16, attn_bf16 = encoder_layer(x, mask, params, n_heads=n_heads, tq=tq)
        out_bf16, attn_bf16 = jax.block_until_ready((out_bf16, attn_bf16))
        np.testing.assert_allclose(np.asarray(out_bf16), np.asarray(out_ref_),
                                   rtol=5e-2, atol=5e-2)
        np.testing.assert_allclose(np.asarray(attn_bf16, dtype=np.float32),
                                   np.asarray(attn_ref_), rtol=5e-2, atol=3e-2)

        # --- f32-operand parity path (tight tolerances; validates kernel structure).
        out_f32, attn_f32 = encoder_layer(x, mask, params, n_heads=n_heads, tq=tq,
                                          compute_dtype=jnp.float32)
        out_f32, attn_f32 = jax.block_until_ready((out_f32, attn_f32))
        np.testing.assert_allclose(np.asarray(out_f32), np.asarray(out_ref_),
                                   rtol=1e-2, atol=1e-2)
        np.testing.assert_allclose(np.asarray(attn_f32, dtype=np.float32),
                                   np.asarray(attn_ref_), rtol=1e-2, atol=1e-2)

    # --- return_attn=False variant: skips the dominant O(S^2) attention-weights
    # writeback; the layer output must match the attn-emitting bf16 run.
    out_noattn = encoder_layer(x, mask, params, n_heads=configs[-1][3],
                               tq=configs[-1][5], return_attn=False)
    out_noattn = jax.block_until_ready(out_noattn)
    np.testing.assert_allclose(np.asarray(out_noattn), np.asarray(out_bf16),
                               rtol=1e-5, atol=1e-5)

    print("KERNEL_OK")
</pallas_src>

<mosaic_0001>
module attributes {stable_mosaic.version = 11 : i64} {
  func.func @encoder_layer_kernel(%arg0: i32, %arg1: i32, %arg2: memref<1x8x32xf32, #tpu.memory_space<vmem>>, %arg3: memref<1x8x8xbf16, #tpu.memory_space<vmem>>, %arg4: memref<32x32xbf16, #tpu.memory_space<vmem>>, %arg5: memref<32x32xbf16, #tpu.memory_space<vmem>>, %arg6: memref<1x32xf32, #tpu.memory_space<vmem>>, %arg7: memref<1x32xf32, #tpu.memory_space<vmem>>, %arg8: memref<32x64xbf16, #tpu.memory_space<vmem>>, %arg9: memref<1x64xf32, #tpu.memory_space<vmem>>, %arg10: memref<64x32xbf16, #tpu.memory_space<vmem>>, %arg11: memref<1x32xf32, #tpu.memory_space<vmem>>, %arg12: memref<1x32xf32, #tpu.memory_space<vmem>>, %arg13: memref<1x32xf32, #tpu.memory_space<vmem>>, %arg14: memref<1x8x32xf32, #tpu.memory_space<vmem>>, %arg15: memref<1x4x8x8xbf16, #tpu.memory_space<vmem>>, %arg16: memref<8x32xbf16, #tpu.memory_space<vmem>>, %arg17: memref<4x8x8xbf16, #tpu.memory_space<vmem>>) attributes {dimension_semantics = [#tpu.dimension_semantics<parallel>, #tpu.dimension_semantics<arbitrary>], iteration_bounds = array<i64: 2, 1>, scalar_prefetch = 0 : i64, scratch_operands = 2 : i64, tpu.core_type = #tpu.core_type<tc>, window_params = [{transform_indices = @transform_0, window_bounds = array<i64: 1, 8, 32>}, {transform_indices = @transform_1, window_bounds = array<i64: 1, 8, 8>}, {pipeline_mode = #tpu.pipeline_mode<synchronous>, transform_indices = @transform_2, window_bounds = array<i64: 32, 32>}, {pipeline_mode = #tpu.pipeline_mode<synchronous>, transform_indices = @transform_3, window_bounds = array<i64: 32, 32>}, {pipeline_mode = #tpu.pipeline_mode<synchronous>, transform_indices = @transform_4, window_bounds = array<i64: 1, 32>}, {pipeline_mode = #tpu.pipeline_mode<synchronous>, transform_indices = @transform_5, window_bounds = array<i64: 1, 32>}, {pipeline_mode = #tpu.pipeline_mode<synchronous>, transform_indices = @transform_6, window_bounds = array<i64: 32, 64>}, {pipeline_mode = #tpu.pipeline_mode<synchronous>, transform_indices = @transform_7, window_bounds = array<i64: 1, 64>}, {pipeline_mode = #tpu.pipeline_mode<synchronous>, transform_indices = @transform_8, window_bounds = array<i64: 64, 32>}, {pipeline_mode = #tpu.pipeline_mode<synchronous>, transform_indices = @transform_9, window_bounds = array<i64: 1, 32>}, {pipeline_mode = #tpu.pipeline_mode<synchronous>, transform_indices = @transform_10, window_bounds = array<i64: 1, 32>}, {pipeline_mode = #tpu.pipeline_mode<synchronous>, transform_indices = @transform_11, window_bounds = array<i64: 1, 32>}, {transform_indices = @transform_12, window_bounds = array<i64: 1, 8, 32>}, {transform_indices = @transform_13, window_bounds = array<i64: 1, 4, 8, 8>}]} {
    %c0_i32 = arith.constant 0 : i32
    %0 = arith.cmpi eq, %arg1, %c0_i32 : i32
    %1 = arith.extui %0 : i1 to i32
    %c0_i32_0 = arith.constant 0 : i32
    %2 = arith.cmpi ne, %1, %c0_i32_0 : i32
    scf.if %2 {
      %c0_86 = arith.constant 0 : index
      %c0_87 = arith.constant 0 : index
      %c0_88 = arith.constant 0 : index
      %168 = vector.load %arg2[%c0_86, %c0_87, %c0_88] : memref<1x8x32xf32, #tpu.memory_space<vmem>>, vector<1x8x32xf32>
      %169 = vector.shape_cast %168 : vector<1x8x32xf32> to vector<8x32xf32>
      %170 = arith.truncf %169 : vector<8x32xf32> to vector<8x32xbf16>
      %c0_89 = arith.constant 0 : index
      %c0_90 = arith.constant 0 : index
      %171 = vector.load %arg4[%c0_89, %c0_90] : memref<32x32xbf16, #tpu.memory_space<vmem>>, vector<32x32xbf16>
      %cst_91 = arith.constant dense<0.000000e+00> : vector<8x32xf32>
      %172 = tpu.matmul %170, %171, %cst_91 {dimension_numbers = #tpu.dot_dimension_numbers<[1], [0], [0], [1], [0, 0, 1, 1], [], []>} : vector<8x32xbf16>, vector<32x32xbf16>, vector<8x32xf32> -> vector<8x32xf32>
      %173 = arith.truncf %172 : vector<8x32xf32> to vector<8x32xbf16>
      %c0_92 = arith.constant 0 : index
      %c0_93 = arith.constant 0 : index
      %174 = vector.load %arg16[%c0_92, %c0_93] : memref<8x32xbf16, #tpu.memory_space<vmem>>, vector<8x32xbf16>
      tpu.vector_store %arg16[%c0_92, %c0_93], %173 {strides = array<i32>} : memref<8x32xbf16, #tpu.memory_space<vmem>>, vector<8x32xbf16>,
      %cst_94 = arith.constant 0.353553385 : f32
      %175 = vector.broadcast %cst_94 : f32 to vector<8x32xf32>
      %176 = arith.mulf %172, %175 : vector<8x32xf32>
      %177 = tpu.transpose %176, [1, 0] : vector<8x32xf32> -> vector<32x8xf32>
      %178 = arith.truncf %177 : vector<32x8xf32> to vector<32x8xbf16>
      %179 = vector.extract_strided_slice %178 {offsets = [0, 0], sizes = [8, 8], strides = [1, 1]} : vector<32x8xbf16> to vector<8x8xbf16>
      %c0_95 = arith.constant 0 : index
      %c0_96 = arith.constant 0 : index
      %c0_97 = arith.constant 0 : index
      %180 = vector.load %arg17[%c0_95, %c0_96, %c0_97] : memref<4x8x8xbf16, #tpu.memory_space<vmem>>, vector<1x8x8xbf16>
      %181 = vector.shape_cast %180 : vector<1x8x8xbf16> to vector<8x8xbf16>
      %182 = vector.shape_cast %179 : vector<8x8xbf16> to vector<1x8x8xbf16>
      tpu.vector_store %arg17[%c0_95, %c0_96, %c0_97], %182 {strides = array<i32>} : memref<4x8x8xbf16, #tpu.memory_space<vmem>>, vector<1x8x8xbf16>,
      %183 = vector.extract_strided_slice %178 {offsets = [8, 0], sizes = [8, 8], strides = [1, 1]} : vector<32x8xbf16> to vector<8x8xbf16>
      %c1_98 = arith.constant 1 : index
      %c0_99 = arith.constant 0 : index
      %c0_100 = arith.constant 0 : index
      %184 = vector.load %arg17[%c1_98, %c0_99, %c0_100] : memref<4x8x8xbf16, #tpu.memory_space<vmem>>, vector<1x8x8xbf16>
      %185 = vector.shape_cast %184 : vector<1x8x8xbf16> to vector<8x8xbf16>
      %186 = vector.shape_cast %183 : vector<8x8xbf16> to vector<1x8x8xbf16>
      tpu.vector_store %arg17[%c1_98, %c0_99, %c0_100], %186 {strides = array<i32>} : memref<4x8x8xbf16, #tpu.memory_space<vmem>>, vector<1x8x8xbf16>,
      %187 = vector.extract_strided_slice %178 {offsets = [16, 0], sizes = [8, 8], strides = [1, 1]} : vector<32x8xbf16> to vector<8x8xbf16>
      %c2_101 = arith.constant 2 : index
      %c0_102 = arith.constant 0 : index
      %c0_103 = arith.constant 0 : index
      %188 = vector.load %arg17[%c2_101, %c0_102, %c0_103] : memref<4x8x8xbf16, #tpu.memory_space<vmem>>, vector<1x8x8xbf16>
      %189 = vector.shape_cast %188 : vector<1x8x8xbf16> to vector<8x8xbf16>
      %190 = vector.shape_cast %187 : vector<8x8xbf16> to vector<1x8x8xbf16>
      tpu.vector_store %arg17[%c2_101, %c0_102, %c0_103], %190 {strides = array<i32>} : memref<4x8x8xbf16, #tpu.memory_space<vmem>>, vector<1x8x8xbf16>,
      %191 = vector.extract_strided_slice %178 {offsets = [24, 0], sizes = [8, 8], strides = [1, 1]} : vector<32x8xbf16> to vector<8x8xbf16>
      %c3_104 = arith.constant 3 : index
      %c0_105 = arith.constant 0 : index
      %c0_106 = arith.constant 0 : index
      %192 = vector.load %arg17[%c3_104, %c0_105, %c0_106] : memref<4x8x8xbf16, #tpu.memory_space<vmem>>, vector<1x8x8xbf16>
      %193 = vector.shape_cast %192 : vector<1x8x8xbf16> to vector<8x8xbf16>
      %194 = vector.shape_cast %191 : vector<8x8xbf16> to vector<1x8x8xbf16>
      tpu.vector_store %arg17[%c3_104, %c0_105, %c0_106], %194 {strides = array<i32>} : memref<4x8x8xbf16, #tpu.memory_space<vmem>>, vector<1x8x8xbf16>,
    } else {
    }
    %c8_i32 = arith.constant 8 : i32
    %3 = arith.muli %arg1, %c8_i32 : i32
    %4 = tpu.assume_multiple %3, 8 : i32
    %5 = arith.index_cast %4 : i32 to index
    %c0 = arith.constant 0 : index
    %6 = vector.load %arg16[%5, %c0] : memref<8x32xbf16, #tpu.memory_space<vmem>>, vector<8x32xbf16>
    %c0_1 = arith.constant 0 : index
    %c0_2 = arith.constant 0 : index
    %c0_3 = arith.constant 0 : index
    %7 = vector.load %arg3[%c0_1, %c0_2, %c0_3] : memref<1x8x8xbf16, #tpu.memory_space<vmem>>, vector<1x8x8xbf16>
    %8 = vector.shape_cast %7 : vector<1x8x8xbf16> to vector<8x8xbf16>
    %9 = arith.extf %8 : vector<8x8xbf16> to vector<8x8xf32>
    %10 = vector.extract_strided_slice %6 {offsets = [0, 0], sizes = [8, 8], strides = [1, 1]} : vector<8x32xbf16> to vector<8x8xbf16>
    %c0_4 = arith.constant 0 : index
    %c0_5 = arith.constant 0 : index
    %c0_6 = arith.constant 0 : index
    %11 = vector.load %arg17[%c0_4, %c0_5, %c0_6] : memref<4x8x8xbf16, #tpu.memory_space<vmem>>, vector<1x8x8xbf16>
    %12 = vector.shape_cast %11 : vector<1x8x8xbf16> to vector<8x8xbf16>
    %cst = arith.constant dense<0.000000e+00> : vector<8x8xf32>
    %13 = tpu.matmul %10, %12, %cst {dimension_numbers = #tpu.dot_dimension_numbers<[1], [0], [0], [1], [0, 0, 1, 1], [], []>} : vector<8x8xbf16>, vector<8x8xbf16>, vector<8x8xf32> -> vector<8x8xf32>
    %14 = arith.addf %13, %9 : vector<8x8xf32>
    %cst_7 = arith.constant dense<0xFF800000> : vector<8xf32>
    %15 = vector.multi_reduction <maximumf>, %14, %cst_7 [1] : vector<8x8xf32> to vector<8xf32>
    %16 = vector.shape_cast %15 : vector<8xf32> to vector<8x1xf32>
    %17 = vector.broadcast %16 : vector<8x1xf32> to vector<8x8xf32>
    %18 = arith.subf %14, %17 : vector<8x8xf32>
    %19 = math.exp %18 : vector<8x8xf32>
    %cst_8 = arith.constant dense<0.000000e+00> : vector<8xf32>
    %20 = vector.multi_reduction <add>, %19, %cst_8 [1] : vector<8x8xf32> to vector<8xf32>
    %21 = vector.shape_cast %20 : vector<8xf32> to vector<8x1xf32>
    %22 = tpu.reciprocal %21 {approx = true} : vector<8x1xf32> -> vector<8x1xf32>
    %23 = vector.broadcast %22 : vector<8x1xf32> to vector<8x8xf32>
    %24 = arith.mulf %19, %23 : vector<8x8xf32>
    %25 = arith.truncf %24 : vector<8x8xf32> to vector<8x8xbf16>
    %c0_9 = arith.constant 0 : index
    %c0_10 = arith.constant 0 : index
    %c0_11 = arith.constant 0 : index
    %c0_12 = arith.constant 0 : index
    %26 = vector.load %arg15[%c0_9, %c0_10, %c0_11, %c0_12] : memref<1x4x8x8xbf16, #tpu.memory_space<vmem>>, vector<1x1x8x8xbf16>
    %27 = vector.shape_cast %26 : vector<1x1x8x8xbf16> to vector<8x8xbf16>
    %28 = vector.shape_cast %25 : vector<8x8xbf16> to vector<1x1x8x8xbf16>
    tpu.vector_store %arg15[%c0_9, %c0_10, %c0_11, %c0_12], %28 {strides = array<i32>} : memref<1x4x8x8xbf16, #tpu.memory_space<vmem>>, vector<1x1x8x8xbf16>,
    %c0_13 = arith.constant 0 : index
    %c0_14 = arith.constant 0 : index
    %29 = vector.load %arg16[%c0_13, %c0_14] : memref<8x32xbf16, #tpu.memory_space<vmem>>, vector<8x8xbf16>
    %30 = arith.truncf %24 : vector<8x8xf32> to vector<8x8xbf16>
    %cst_15 = arith.constant dense<0.000000e+00> : vector<8x8xf32>
    %31 = tpu.matmul %30, %29, %cst_15 {dimension_numbers = #tpu.dot_dimension_numbers<[1], [0], [0], [1], [0, 0, 1, 1], [], []>} : vector<8x8xbf16>, vector<8x8xbf16>, vector<8x8xf32> -> vector<8x8xf32>
    %32 = vector.extract_strided_slice %6 {offsets = [0, 8], sizes = [8, 8], strides = [1, 1]} : vector<8x32xbf16> to vector<8x8xbf16>
    %c1 = arith.constant 1 : index
    %c0_16 = arith.constant 0 : index
    %c0_17 = arith.constant 0 : index
    %33 = vector.load %arg17[%c1, %c0_16, %c0_17] : memref<4x8x8xbf16, #tpu.memory_space<vmem>>, vector<1x8x8xbf16>
    %34 = vector.shape_cast %33 : vector<1x8x8xbf16> to vector<8x8xbf16>
    %cst_18 = arith.constant dense<0.000000e+00> : vector<8x8xf32>
    %35 = tpu.matmul %32, %34, %cst_18 {dimension_numbers = #tpu.dot_dimension_numbers<[1], [0], [0], [1], [0, 0, 1, 1], [], []>} : vector<8x8xbf16>, vector<8x8xbf16>, vector<8x8xf32> -> vector<8x8xf32>
    %36 = arith.addf %35, %9 : vector<8x8xf32>
    %cst_19 = arith.constant dense<0xFF800000> : vector<8xf32>
    %37 = vector.multi_reduction <maximumf>, %36, %cst_19 [1] : vector<8x8xf32> to vector<8xf32>
    %38 = vector.shape_cast %37 : vector<8xf32> to vector<8x1xf32>
    %39 = vector.broadcast %38 : vector<8x1xf32> to vector<8x8xf32>
    %40 = arith.subf %36, %39 : vector<8x8xf32>
    %41 = math.exp %40 : vector<8x8xf32>
    %cst_20 = arith.constant dense<0.000000e+00> : vector<8xf32>
    %42 = vector.multi_reduction <add>, %41, %cst_20 [1] : vector<8x8xf32> to vector<8xf32>
    %43 = vector.shape_cast %42 : vector<8xf32> to vector<8x1xf32>
    %44 = tpu.reciprocal %43 {approx = true} : vector<8x1xf32> -> vector<8x1xf32>
    %45 = vector.broadcast %44 : vector<8x1xf32> to vector<8x8xf32>
    %46 = arith.mulf %41, %45 : vector<8x8xf32>
    %47 = arith.truncf %46 : vector<8x8xf32> to vector<8x8xbf16>
    %c0_21 = arith.constant 0 : index
    %c1_22 = arith.constant 1 : index
    %c0_23 = arith.constant 0 : index
    %c0_24 = arith.constant 0 : index
    %48 = vector.load %arg15[%c0_21, %c1_22, %c0_23, %c0_24] : memref<1x4x8x8xbf16, #tpu.memory_space<vmem>>, vector<1x1x8x8xbf16>
    %49 = vector.shape_cast %48 : vector<1x1x8x8xbf16> to vector<8x8xbf16>
    %50 = vector.shape_cast %47 : vector<8x8xbf16> to vector<1x1x8x8xbf16>
    tpu.vector_store %arg15[%c0_21, %c1_22, %c0_23, %c0_24], %50 {strides = array<i32>} : memref<1x4x8x8xbf16, #tpu.memory_space<vmem>>, vector<1x1x8x8xbf16>,
    %c0_25 = arith.constant 0 : index
    %c8 = arith.constant 8 : index
    %51 = vector.load %arg16[%c0_25, %c8] : memref<8x32xbf16, #tpu.memory_space<vmem>>, vector<8x8xbf16>
    %52 = arith.truncf %46 : vector<8x8xf32> to vector<8x8xbf16>
    %cst_26 = arith.constant dense<0.000000e+00> : vector<8x8xf32>
    %53 = tpu.matmul %52, %51, %cst_26 {dimension_numbers = #tpu.dot_dimension_numbers<[1], [0], [0], [1], [0, 0, 1, 1], [], []>} : vector<8x8xbf16>, vector<8x8xbf16>, vector<8x8xf32> -> vector<8x8xf32>
    %54 = vector.extract_strided_slice %6 {offsets = [0, 16], sizes = [8, 8], strides = [1, 1]} : vector<8x32xbf16> to vector<8x8xbf16>
    %c2 = arith.constant 2 : index
    %c0_27 = arith.constant 0 : index
    %c0_28 = arith.constant 0 : index
    %55 = vector.load %arg17[%c2, %c0_27, %c0_28] : memref<4x8x8xbf16, #tpu.memory_space<vmem>>, vector<1x8x8xbf16>
    %56 = vector.shape_cast %55 : vector<1x8x8xbf16> to vector<8x8xbf16>
    %cst_29 = arith.constant dense<0.000000e+00> : vector<8x8xf32>
    %57 = tpu.matmul %54, %56, %cst_29 {dimension_numbers = #tpu.dot_dimension_numbers<[1], [0], [0], [1], [0, 0, 1, 1], [], []>} : vector<8x8xbf16>, vector<8x8xbf16>, vector<8x8xf32> -> vector<8x8xf32>
    %58 = arith.addf %57, %9 : vector<8x8xf32>
    %cst_30 = arith.constant dense<0xFF800000> : vector<8xf32>
    %59 = vector.multi_reduction <maximumf>, %58, %cst_30 [1] : vector<8x8xf32> to vector<8xf32>
    %60 = vector.shape_cast %59 : vector<8xf32> to vector<8x1xf32>
    %61 = vector.broadcast %60 : vector<8x1xf32> to vector<8x8xf32>
    %62 = arith.subf %58, %61 : vector<8x8xf32>
    %63 = math.exp %62 : vector<8x8xf32>
    %cst_31 = arith.constant dense<0.000000e+00> : vector<8xf32>
    %64 = vector.multi_reduction <add>, %63, %cst_31 [1] : vector<8x8xf32> to vector<8xf32>
    %65 = vector.shape_cast %64 : vector<8xf32> to vector<8x1xf32>
    %66 = tpu.reciprocal %65 {approx = true} : vector<8x1xf32> -> vector<8x1xf32>
    %67 = vector.broadcast %66 : vector<8x1xf32> to vector<8x8xf32>
    %68 = arith.mulf %63, %67 : vector<8x8xf32>
    %69 = arith.truncf %68 : vector<8x8xf32> to vector<8x8xbf16>
    %c0_32 = arith.constant 0 : index
    %c2_33 = arith.constant 2 : index
    %c0_34 = arith.constant 0 : index
    %c0_35 = arith.constant 0 : index
    %70 = vector.load %arg15[%c0_32, %c2_33, %c0_34, %c0_35] : memref<1x4x8x8xbf16, #tpu.memory_space<vmem>>, vector<1x1x8x8xbf16>
    %71 = vector.shape_cast %70 : vector<1x1x8x8xbf16> to vector<8x8xbf16>
    %72 = vector.shape_cast %69 : vector<8x8xbf16> to vector<1x1x8x8xbf16>
    tpu.vector_store %arg15[%c0_32, %c2_33, %c0_34, %c0_35], %72 {strides = array<i32>} : memref<1x4x8x8xbf16, #tpu.memory_space<vmem>>, vector<1x1x8x8xbf16>,
    %c0_36 = arith.constant 0 : index
    %c16 = arith.constant 16 : index
    %73 = vector.load %arg16[%c0_36, %c16] : memref<8x32xbf16, #tpu.memory_space<vmem>>, vector<8x8xbf16>
    %74 = arith.truncf %68 : vector<8x8xf32> to vector<8x8xbf16>
    %cst_37 = arith.constant dense<0.000000e+00> : vector<8x8xf32>
    %75 = tpu.matmul %74, %73, %cst_37 {dimension_numbers = #tpu.dot_dimension_numbers<[1], [0], [0], [1], [0, 0, 1, 1], [], []>} : vector<8x8xbf16>, vector<8x8xbf16>, vector<8x8xf32> -> vector<8x8xf32>
    %76 = vector.extract_strided_slice %6 {offsets = [0, 24], sizes = [8, 8], strides = [1, 1]} : vector<8x32xbf16> to vector<8x8xbf16>
    %c3 = arith.constant 3 : index
    %c0_38 = arith.constant 0 : index
    %c0_39 = arith.constant 0 : index
    %77 = vector.load %arg17[%c3, %c0_38, %c0_39] : memref<4x8x8xbf16, #tpu.memory_space<vmem>>, vector<1x8x8xbf16>
    %78 = vector.shape_cast %77 : vector<1x8x8xbf16> to vector<8x8xbf16>
    %cst_40 = arith.constant dense<0.000000e+00> : vector<8x8xf32>
    %79 = tpu.matmul %76, %78, %cst_40 {dimension_numbers = #tpu.dot_dimension_numbers<[1], [0], [0], [1], [0, 0, 1, 1], [], []>} : vector<8x8xbf16>, vector<8x8xbf16>, vector<8x8xf32> -> vector<8x8xf32>
    %80 = arith.addf %79, %9 : vector<8x8xf32>
    %cst_41 = arith.constant dense<0xFF800000> : vector<8xf32>
    %81 = vector.multi_reduction <maximumf>, %80, %cst_41 [1] : vector<8x8xf32> to vector<8xf32>
    %82 = vector.shape_cast %81 : vector<8xf32> to vector<8x1xf32>
    %83 = vector.broadcast %82 : vector<8x1xf32> to vector<8x8xf32>
    %84 = arith.subf %80, %83 : vector<8x8xf32>
    %85 = math.exp %84 : vector<8x8xf32>
    %cst_42 = arith.constant dense<0.000000e+00> : vector<8xf32>
    %86 = vector.multi_reduction <add>, %85, %cst_42 [1] : vector<8x8xf32> to vector<8xf32>
    %87 = vector.shape_cast %86 : vector<8xf32> to vector<8x1xf32>
    %88 = tpu.reciprocal %87 {approx = true} : vector<8x1xf32> -> vector<8x1xf32>
    %89 = vector.broadcast %88 : vector<8x1xf32> to vector<8x8xf32>
    %90 = arith.mulf %85, %89 : vector<8x8xf32>
    %91 = arith.truncf %90 : vector<8x8xf32> to vector<8x8xbf16>
    %c0_43 = arith.constant 0 : index
    %c3_44 = arith.constant 3 : index
    %c0_45 = arith.constant 0 : index
    %c0_46 = arith.constant 0 : index
    %92 = vector.load %arg15[%c0_43, %c3_44, %c0_45, %c0_46] : memref<1x4x8x8xbf16, #tpu.memory_space<vmem>>, vector<1x1x8x8xbf16>
    %93 = vector.shape_cast %92 : vector<1x1x8x8xbf16> to vector<8x8xbf16>
    %94 = vector.shape_cast %91 : vector<8x8xbf16> to vector<1x1x8x8xbf16>
    tpu.vector_store %arg15[%c0_43, %c3_44, %c0_45, %c0_46], %94 {strides = array<i32>} : memref<1x4x8x8xbf16, #tpu.memory_space<vmem>>, vector<1x1x8x8xbf16>,
    %c0_47 = arith.constant 0 : index
    %c24 = arith.constant 24 : index
    %95 = vector.load %arg16[%c0_47, %c24] : memref<8x32xbf16, #tpu.memory_space<vmem>>, vector<8x8xbf16>
    %96 = arith.truncf %90 : vector<8x8xf32> to vector<8x8xbf16>
    %cst_48 = arith.constant dense<0.000000e+00> : vector<8x8xf32>
    %97 = tpu.matmul %96, %95, %cst_48 {dimension_numbers = #tpu.dot_dimension_numbers<[1], [0], [0], [1], [0, 0, 1, 1], [], []>} : vector<8x8xbf16>, vector<8x8xbf16>, vector<8x8xf32> -> vector<8x8xf32>
    %98 = tpu.concatenate %31, %53, %75, %97 in 1 : vector<8x8xf32>, vector<8x8xf32>, vector<8x8xf32>, vector<8x8xf32> -> vector<8x32xf32>
    %99 = arith.truncf %98 : vector<8x32xf32> to vector<8x32xbf16>
    %c0_49 = arith.constant 0 : index
    %c0_50 = arith.constant 0 : index
    %100 = vector.load %arg5[%c0_49, %c0_50] : memref<32x32xbf16, #tpu.memory_space<vmem>>, vector<32x32xbf16>
    %cst_51 = arith.constant dense<0.000000e+00> : vector<8x32xf32>
    %101 = tpu.matmul %99, %100, %cst_51 {dimension_numbers = #tpu.dot_dimension_numbers<[1], [0], [0], [1], [0, 0, 1, 1], [], []>} : vector<8x32xbf16>, vector<32x32xbf16>, vector<8x32xf32> -> vector<8x32xf32>
    %c0_52 = arith.constant 0 : index
    %102 = arith.index_cast %4 : i32 to index
    %c0_53 = arith.constant 0 : index
    %103 = vector.load %arg2[%c0_52, %102, %c0_53] : memref<1x8x32xf32, #tpu.memory_space<vmem>>, vector<1x8x32xf32>
    %104 = vector.shape_cast %103 : vector<1x8x32xf32> to vector<8x32xf32>
    %105 = arith.addf %104, %101 : vector<8x32xf32>
    %c0_54 = arith.constant 0 : index
    %c0_55 = arith.constant 0 : index
    %106 = vector.load %arg6[%c0_54, %c0_55] : memref<1x32xf32, #tpu.memory_space<vmem>>, vector<1x32xf32>
    %c0_56 = arith.constant 0 : index
    %c0_57 = arith.constant 0 : index
    %107 = vector.load %arg7[%c0_56, %c0_57] : memref<1x32xf32, #tpu.memory_space<vmem>>, vector<1x32xf32>
    %cst_58 = arith.constant dense<0.000000e+00> : vector<8xf32>
    %108 = vector.multi_reduction <add>, %105, %cst_58 [1] : vector<8x32xf32> to vector<8xf32>
    %109 = vector.shape_cast %108 : vector<8xf32> to vector<8x1xf32>
    %cst_59 = arith.constant 3.200000e+01 : f32
    %110 = vector.broadcast %cst_59 : f32 to vector<8x1xf32>
    %111 = arith.divf %109, %110 : vector<8x1xf32>
    %112 = vector.broadcast %111 : vector<8x1xf32> to vector<8x32xf32>
    %113 = arith.subf %105, %112 : vector<8x32xf32>
    %114 = arith.mulf %113, %113 : vector<8x32xf32>
    %cst_60 = arith.constant dense<0.000000e+00> : vector<8xf32>
    %115 = vector.multi_reduction <add>, %114, %cst_60 [1] : vector<8x32xf32> to vector<8xf32>
    %116 = vector.shape_cast %115 : vector<8xf32> to vector<8x1xf32>
    %cst_61 = arith.constant 3.200000e+01 : f32
    %117 = vector.broadcast %cst_61 : f32 to vector<8x1xf32>
    %118 = arith.divf %116, %117 : vector<8x1xf32>
    %cst_62 = arith.constant 9.99999974E-6 : f32
    %119 = vector.broadcast %cst_62 : f32 to vector<8x1xf32>
    %120 = arith.addf %118, %119 : vector<8x1xf32>
    %121 = math.rsqrt %120 : vector<8x1xf32>
    %122 = vector.broadcast %121 : vector<8x1xf32> to vector<8x32xf32>
    %123 = arith.mulf %113, %122 : vector<8x32xf32>
    %124 = vector.broadcast %106 : vector<1x32xf32> to vector<8x32xf32>
    %125 = arith.mulf %123, %124 : vector<8x32xf32>
    %126 = vector.broadcast %107 : vector<1x32xf32> to vector<8x32xf32>
    %127 = arith.addf %125, %126 : vector<8x32xf32>
    %128 = arith.truncf %127 : vector<8x32xf32> to vector<8x32xbf16>
    %c0_63 = arith.constant 0 : index
    %c0_64 = arith.constant 0 : index
    %129 = vector.load %arg8[%c0_63, %c0_64] : memref<32x64xbf16, #tpu.memory_space<vmem>>, vector<32x64xbf16>
    %cst_65 = arith.constant dense<0.000000e+00> : vector<8x64xf32>
    %130 = tpu.matmul %128, %129, %cst_65 {dimension_numbers = #tpu.dot_dimension_numbers<[1], [0], [0], [1], [0, 0, 1, 1], [], []>} : vector<8x32xbf16>, vector<32x64xbf16>, vector<8x64xf32> -> vector<8x64xf32>
    %c0_66 = arith.constant 0 : index
    %c0_67 = arith.constant 0 : index
    %131 = vector.load %arg9[%c0_66, %c0_67] : memref<1x64xf32, #tpu.memory_space<vmem>>, vector<1x64xf32>
    %132 = vector.broadcast %131 : vector<1x64xf32> to vector<8x64xf32>
    %133 = arith.addf %130, %132 : vector<8x64xf32>
    %cst_68 = arith.constant 0.000000e+00 : f32
    %134 = vector.broadcast %cst_68 : f32 to vector<8x64xf32>
    %135 = arith.maximumf %133, %134 : vector<8x64xf32>
    %136 = arith.truncf %135 : vector<8x64xf32> to vector<8x64xbf16>
    %c0_69 = arith.constant 0 : index
    %c0_70 = arith.constant 0 : index
    %137 = vector.load %arg10[%c0_69, %c0_70] : memref<64x32xbf16, #tpu.memory_space<vmem>>, vector<64x32xbf16>
    %cst_71 = arith.constant dense<0.000000e+00> : vector<8x32xf32>
    %138 = tpu.matmul %136, %137, %cst_71 {dimension_numbers = #tpu.dot_dimension_numbers<[1], [0], [0], [1], [0, 0, 1, 1], [], []>} : vector<8x64xbf16>, vector<64x32xbf16>, vector<8x32xf32> -> vector<8x32xf32>
    %c0_72 = arith.constant 0 : index
    %c0_73 = arith.constant 0 : index
    %139 = vector.load %arg11[%c0_72, %c0_73] : memref<1x32xf32, #tpu.memory_space<vmem>>, vector<1x32xf32>
    %140 = vector.broadcast %139 : vector<1x32xf32> to vector<8x32xf32>
    %141 = arith.addf %138, %140 : vector<8x32xf32>
    %142 = arith.addf %141, %127 : vector<8x32xf32>
    %c0_74 = arith.constant 0 : index
    %c0_75 = arith.constant 0 : index
    %143 = vector.load %arg12[%c0_74, %c0_75] : memref<1x32xf32, #tpu.memory_space<vmem>>, vector<1x32xf32>
    %c0_76 = arith.constant 0 : index
    %c0_77 = arith.constant 0 : index
    %144 = vector.load %arg13[%c0_76, %c0_77] : memref<1x32xf32, #tpu.memory_space<vmem>>, vector<1x32xf32>
    %cst_78 = arith.constant dense<0.000000e+00> : vector<8xf32>
    %145 = vector.multi_reduction <add>, %142, %cst_78 [1] : vector<8x32xf32> to vector<8xf32>
    %146 = vector.shape_cast %145 : vector<8xf32> to vector<8x1xf32>
    %cst_79 = arith.constant 3.200000e+01 : f32
    %147 = vector.broadcast %cst_79 : f32 to vector<8x1xf32>
    %148 = arith.divf %146, %147 : vector<8x1xf32>
    %149 = vector.broadcast %148 : vector<8x1xf32> to vector<8x32xf32>
    %150 = arith.subf %142, %149 : vector<8x32xf32>
    %151 = arith.mulf %150, %150 : vector<8x32xf32>
    %cst_80 = arith.constant dense<0.000000e+00> : vector<8xf32>
    %152 = vector.multi_reduction <add>, %151, %cst_80 [1] : vector<8x32xf32> to vector<8xf32>
    %153 = vector.shape_cast %152 : vector<8xf32> to vector<8x1xf32>
    %cst_81 = arith.constant 3.200000e+01 : f32
    %154 = vector.broadcast %cst_81 : f32 to vector<8x1xf32>
    %155 = arith.divf %153, %154 : vector<8x1xf32>
    %cst_82 = arith.constant 9.99999974E-6 : f32
    %156 = vector.broadcast %cst_82 : f32 to vector<8x1xf32>
    %157 = arith.addf %155, %156 : vector<8x1xf32>
    %158 = math.rsqrt %157 : vector<8x1xf32>
    %159 = vector.broadcast %158 : vector<8x1xf32> to vector<8x32xf32>
    %160 = arith.mulf %150, %159 : vector<8x32xf32>
    %161 = vector.broadcast %143 : vector<1x32xf32> to vector<8x32xf32>
    %162 = arith.mulf %160, %161 : vector<8x32xf32>
    %163 = vector.broadcast %144 : vector<1x32xf32> to vector<8x32xf32>
    %164 = arith.addf %162, %163 : vector<8x32xf32>
    %c0_83 = arith.constant 0 : index
    %c0_84 = arith.constant 0 : index
    %c0_85 = arith.constant 0 : index
    %165 = vector.load %arg14[%c0_83, %c0_84, %c0_85] : memref<1x8x32xf32, #tpu.memory_space<vmem>>, vector<1x8x32xf32>
    %166 = vector.shape_cast %165 : vector<1x8x32xf32> to vector<8x32xf32>
    %167 = vector.shape_cast %164 : vector<8x32xf32> to vector<1x8x32xf32>
    tpu.vector_store %arg14[%c0_83, %c0_84, %c0_85], %167 {strides = array<i32>} : memref<1x8x32xf32, #tpu.memory_space<vmem>>, vector<1x8x32xf32>,
    return
  }
  func.func @transform_0(%arg0: i32, %arg1: i32) -> (i32, i32, i32) {
    %c0_i32 = arith.constant 0 : i32
    %c0_i32_0 = arith.constant 0 : i32
    %c0_i32_1 = arith.constant 0 : i32
    return %arg0, %c0_i32, %c0_i32_0 : i32, i32, i32
  }
  func.func @transform_1(%arg0: i32, %arg1: i32) -> (i32, i32, i32) {
    %c0_i32 = arith.constant 0 : i32
    %c0_i32_0 = arith.constant 0 : i32
    return %arg0, %arg1, %c0_i32 : i32, i32, i32
  }
  func.func @transform_2(%arg0: i32, %arg1: i32) -> (i32, i32) {
    %c0_i32 = arith.constant 0 : i32
    %c0_i32_0 = arith.constant 0 : i32
    %c0_i32_1 = arith.constant 0 : i32
    return %c0_i32, %c0_i32_0 : i32, i32
  }
  func.func @transform_3(%arg0: i32, %arg1: i32) -> (i32, i32) {
    %c0_i32 = arith.constant 0 : i32
    %c0_i32_0 = arith.constant 0 : i32
    %c0_i32_1 = arith.constant 0 : i32
    return %c0_i32, %c0_i32_0 : i32, i32
  }
  func.func @transform_4(%arg0: i32, %arg1: i32) -> (i32, i32) {
    %c0_i32 = arith.constant 0 : i32
    %c0_i32_0 = arith.constant 0 : i32
    %c0_i32_1 = arith.constant 0 : i32
    return %c0_i32, %c0_i32_0 : i32, i32
  }
  func.func @transform_5(%arg0: i32, %arg1: i32) -> (i32, i32) {
    %c0_i32 = arith.constant 0 : i32
    %c0_i32_0 = arith.constant 0 : i32
    %c0_i32_1 = arith.constant 0 : i32
    return %c0_i32, %c0_i32_0 : i32, i32
  }
  func.func @transform_6(%arg0: i32, %arg1: i32) -> (i32, i32) {
    %c0_i32 = arith.constant 0 : i32
    %c0_i32_0 = arith.constant 0 : i32
    %c0_i32_1 = arith.constant 0 : i32
    return %c0_i32, %c0_i32_0 : i32, i32
  }
  func.func @transform_7(%arg0: i32, %arg1: i32) -> (i32, i32) {
    %c0_i32 = arith.constant 0 : i32
    %c0_i32_0 = arith.constant 0 : i32
    %c0_i32_1 = arith.constant 0 : i32
    return %c0_i32, %c0_i32_0 : i32, i32
  }
  func.func @transform_8(%arg0: i32, %arg1: i32) -> (i32, i32) {
    %c0_i32 = arith.constant 0 : i32
    %c0_i32_0 = arith.constant 0 : i32
    %c0_i32_1 = arith.constant 0 : i32
    return %c0_i32, %c0_i32_0 : i32, i32
  }
  func.func @transform_9(%arg0: i32, %arg1: i32) -> (i32, i32) {
    %c0_i32 = arith.constant 0 : i32
    %c0_i32_0 = arith.constant 0 : i32
    %c0_i32_1 = arith.constant 0 : i32
    return %c0_i32, %c0_i32_0 : i32, i32
  }
  func.func @transform_10(%arg0: i32, %arg1: i32) -> (i32, i32) {
    %c0_i32 = arith.constant 0 : i32
    %c0_i32_0 = arith.constant 0 : i32
    %c0_i32_1 = arith.constant 0 : i32
    return %c0_i32, %c0_i32_0 : i32, i32
  }
  func.func @transform_11(%arg0: i32, %arg1: i32) -> (i32, i32) {
    %c0_i32 = arith.constant 0 : i32
    %c0_i32_0 = arith.constant 0 : i32
    %c0_i32_1 = arith.constant 0 : i32
    return %c0_i32, %c0_i32_0 : i32, i32
  }
  func.func @transform_12(%arg0: i32, %arg1: i32) -> (i32, i32, i32) {
    %c0_i32 = arith.constant 0 : i32
    %c0_i32_0 = arith.constant 0 : i32
    return %arg0, %arg1, %c0_i32 : i32, i32, i32
  }
  func.func @transform_13(%arg0: i32, %arg1: i32) -> (i32, i32, i32, i32) {
    %c0_i32 = arith.constant 0 : i32
    %c0_i32_0 = arith.constant 0 : i32
    %c0_i32_1 = arith.constant 0 : i32
    return %arg0, %c0_i32, %arg1, %c0_i32_0 : i32, i32, i32, i32
  }
}

module attributes {stable_mosaic.version = 11 : i64} {
  func.func @encoder_layer_kernel(%arg0: i32, %arg1: i32, %arg2: memref<1x8x32xf32, #tpu.memory_space<vmem>>, %arg3: memref<1x8x8xbf16, #tpu.memory_space<vmem>>, %arg4: memref<32x32xbf16, #tpu.memory_space<vmem>>, %arg5: memref<32x32xbf16, #tpu.memory_space<vmem>>, %arg6: memref<1x32xf32, #tpu.memory_space<vmem>>, %arg7: memref<1x32xf32, #tpu.memory_space<vmem>>, %arg8: memref<32x64xbf16, #tpu.memory_space<vmem>>, %arg9: memref<1x64xf32, #tpu.memory_space<vmem>>, %arg10: memref<64x32xbf16, #tpu.memory_space<vmem>>, %arg11: memref<1x32xf32, #tpu.memory_space<vmem>>, %arg12: memref<1x32xf32, #tpu.memory_space<vmem>>, %arg13: memref<1x32xf32, #tpu.memory_space<vmem>>, %arg14: memref<1x8x32xf32, #tpu.memory_space<vmem>>, %arg15: memref<1x4x8x8xbf16, #tpu.memory_space<vmem>>, %arg16: memref<8x32xbf16, #tpu.memory_space<vmem>>, %arg17: memref<4x8x8xbf16, #tpu.memory_space<vmem>>) attributes {dimension_semantics = [#tpu.dimension_semantics<parallel>, #tpu.dimension_semantics<arbitrary>], iteration_bounds = array<i64: 2, 1>, scalar_prefetch = 0 : i64, scratch_operands = 2 : i64, tpu.core_type = #tpu.core_type<tc>, window_params = [{transform_indices = @transform_0, window_bounds = array<i64: 1, 8, 32>}, {transform_indices = @transform_1, window_bounds = array<i64: 1, 8, 8>}, {pipeline_mode = #tpu.pipeline_mode<synchronous>, transform_indices = @transform_2, window_bounds = array<i64: 32, 32>}, {pipeline_mode = #tpu.pipeline_mode<synchronous>, transform_indices = @transform_3, window_bounds = array<i64: 32, 32>}, {pipeline_mode = #tpu.pipeline_mode<synchronous>, transform_indices = @transform_4, window_bounds = array<i64: 1, 32>}, {pipeline_mode = #tpu.pipeline_mode<synchronous>, transform_indices = @transform_5, window_bounds = array<i64: 1, 32>}, {pipeline_mode = #tpu.pipeline_mode<synchronous>, transform_indices = @transform_6, window_bounds = array<i64: 32, 64>}, {pipeline_mode = #tpu.pipeline_mode<synchronous>, transform_indices = @transform_7, window_bounds = array<i64: 1, 64>}, {pipeline_mode = #tpu.pipeline_mode<synchronous>, transform_indices = @transform_8, window_bounds = array<i64: 64, 32>}, {pipeline_mode = #tpu.pipeline_mode<synchronous>, transform_indices = @transform_9, window_bounds = array<i64: 1, 32>}, {pipeline_mode = #tpu.pipeline_mode<synchronous>, transform_indices = @transform_10, window_bounds = array<i64: 1, 32>}, {pipeline_mode = #tpu.pipeline_mode<synchronous>, transform_indices = @transform_11, window_bounds = array<i64: 1, 32>}, {transform_indices = @transform_12, window_bounds = array<i64: 1, 8, 32>}, {transform_indices = @transform_13, window_bounds = array<i64: 1, 4, 8, 8>}]} {
    %c0_i32 = arith.constant 0 : i32
    %0 = arith.cmpi eq, %arg1, %c0_i32 : i32
    %1 = arith.extui %0 : i1 to i32
    %c0_i32_0 = arith.constant 0 : i32
    %2 = arith.cmpi ne, %1, %c0_i32_0 : i32
    scf.if %2 {
      %c0_86 = arith.constant 0 : index
      %c0_87 = arith.constant 0 : index
      %c0_88 = arith.constant 0 : index
      %168 = vector.load %arg2[%c0_86, %c0_87, %c0_88] : memref<1x8x32xf32, #tpu.memory_space<vmem>>, vector<1x8x32xf32>
      %169 = vector.shape_cast %168 : vector<1x8x32xf32> to vector<8x32xf32>
      %170 = arith.truncf %169 : vector<8x32xf32> to vector<8x32xbf16>
      %c0_89 = arith.constant 0 : index
      %c0_90 = arith.constant 0 : index
      %171 = vector.load %arg4[%c0_89, %c0_90] : memref<32x32xbf16, #tpu.memory_space<vmem>>, vector<32x32xbf16>
      %cst_91 = arith.constant dense<0.000000e+00> : vector<8x32xf32>
      %172 = tpu.matmul %170, %171, %cst_91 {dimension_numbers = #tpu.dot_dimension_numbers<[1], [0], [0], [1], [0, 0, 1, 1], [], []>} : vector<8x32xbf16>, vector<32x32xbf16>, vector<8x32xf32> -> vector<8x32xf32>
      %173 = arith.truncf %172 : vector<8x32xf32> to vector<8x32xbf16>
      %c0_92 = arith.constant 0 : index
      %c0_93 = arith.constant 0 : index
      %174 = vector.load %arg16[%c0_92, %c0_93] : memref<8x32xbf16, #tpu.memory_space<vmem>>, vector<8x32xbf16>
      tpu.vector_store %arg16[%c0_92, %c0_93], %173 {strides = array<i32>} : memref<8x32xbf16, #tpu.memory_space<vmem>>, vector<8x32xbf16>,
      %cst_94 = arith.constant 0.353553385 : f32
      %175 = vector.broadcast %cst_94 : f32 to vector<8x32xf32>
      %176 = arith.mulf %172, %175 : vector<8x32xf32>
      %177 = tpu.transpose %176, [1, 0] : vector<8x32xf32> -> vector<32x8xf32>
      %178 = arith.truncf %177 : vector<32x8xf32> to vector<32x8xbf16>
      %179 = vector.extract_strided_slice %178 {offsets = [0, 0], sizes = [8, 8], strides = [1, 1]} : vector<32x8xbf16> to vector<8x8xbf16>
      %c0_95 = arith.constant 0 : index
      %c0_96 = arith.constant 0 : index
      %c0_97 = arith.constant 0 : index
      %180 = vector.load %arg17[%c0_95, %c0_96, %c0_97] : memref<4x8x8xbf16, #tpu.memory_space<vmem>>, vector<1x8x8xbf16>
      %181 = vector.shape_cast %180 : vector<1x8x8xbf16> to vector<8x8xbf16>
      %182 = vector.shape_cast %179 : vector<8x8xbf16> to vector<1x8x8xbf16>
      tpu.vector_store %arg17[%c0_95, %c0_96, %c0_97], %182 {strides = array<i32>} : memref<4x8x8xbf16, #tpu.memory_space<vmem>>, vector<1x8x8xbf16>,
      %183 = vector.extract_strided_slice %178 {offsets = [8, 0], sizes = [8, 8], strides = [1, 1]} : vector<32x8xbf16> to vector<8x8xbf16>
      %c1_98 = arith.constant 1 : index
      %c0_99 = arith.constant 0 : index
      %c0_100 = arith.constant 0 : index
      %184 = vector.load %arg17[%c1_98, %c0_99, %c0_100] : memref<4x8x8xbf16, #tpu.memory_space<vmem>>, vector<1x8x8xbf16>
      %185 = vector.shape_cast %184 : vector<1x8x8xbf16> to vector<8x8xbf16>
      %186 = vector.shape_cast %183 : vector<8x8xbf16> to vector<1x8x8xbf16>
      tpu.vector_store %arg17[%c1_98, %c0_99, %c0_100], %186 {strides = array<i32>} : memref<4x8x8xbf16, #tpu.memory_space<vmem>>, vector<1x8x8xbf16>,
      %187 = vector.extract_strided_slice %178 {offsets = [16, 0], sizes = [8, 8], strides = [1, 1]} : vector<32x8xbf16> to vector<8x8xbf16>
      %c2_101 = arith.constant 2 : index
      %c0_102 = arith.constant 0 : index
      %c0_103 = arith.constant 0 : index
      %188 = vector.load %arg17[%c2_101, %c0_102, %c0_103] : memref<4x8x8xbf16, #tpu.memory_space<vmem>>, vector<1x8x8xbf16>
      %189 = vector.shape_cast %188 : vector<1x8x8xbf16> to vector<8x8xbf16>
      %190 = vector.shape_cast %187 : vector<8x8xbf16> to vector<1x8x8xbf16>
      tpu.vector_store %arg17[%c2_101, %c0_102, %c0_103], %190 {strides = array<i32>} : memref<4x8x8xbf16, #tpu.memory_space<vmem>>, vector<1x8x8xbf16>,
      %191 = vector.extract_strided_slice %178 {offsets = [24, 0], sizes = [8, 8], strides = [1, 1]} : vector<32x8xbf16> to vector<8x8xbf16>
      %c3_104 = arith.constant 3 : index
      %c0_105 = arith.constant 0 : index
      %c0_106 = arith.constant 0 : index
      %192 = vector.load %arg17[%c3_104, %c0_105, %c0_106] : memref<4x8x8xbf16, #tpu.memory_space<vmem>>, vector<1x8x8xbf16>
      %193 = vector.shape_cast %192 : vector<1x8x8xbf16> to vector<8x8xbf16>
      %194 = vector.shape_cast %191 : vector<8x8xbf16> to vector<1x8x8xbf16>
      tpu.vector_store %arg17[%c3_104, %c0_105, %c0_106], %194 {strides = array<i32>} : memref<4x8x8xbf16, #tpu.memory_space<vmem>>, vector<1x8x8xbf16>,
    } else {
    }
    %c8_i32 = arith.constant 8 : i32
    %3 = arith.muli %arg1, %c8_i32 : i32
    %4 = tpu.assume_multiple %3, 8 : i32
    %5 = arith.index_cast %4 : i32 to index
    %c0 = arith.constant 0 : index
    %6 = vector.load %arg16[%5, %c0] : memref<8x32xbf16, #tpu.memory_space<vmem>>, vector<8x32xbf16>
    %c0_1 = arith.constant 0 : index
    %c0_2 = arith.constant 0 : index
    %c0_3 = arith.constant 0 : index
    %7 = vector.load %arg3[%c0_1, %c0_2, %c0_3] : memref<1x8x8xbf16, #tpu.memory_space<vmem>>, vector<1x8x8xbf16>
    %8 = vector.shape_cast %7 : vector<1x8x8xbf16> to vector<8x8xbf16>
    %9 = arith.extf %8 : vector<8x8xbf16> to vector<8x8xf32>
    %10 = vector.extract_strided_slice %6 {offsets = [0, 0], sizes = [8, 8], strides = [1, 1]} : vector<8x32xbf16> to vector<8x8xbf16>
    %c0_4 = arith.constant 0 : index
    %c0_5 = arith.constant 0 : index
    %c0_6 = arith.constant 0 : index
    %11 = vector.load %arg17[%c0_4, %c0_5, %c0_6] : memref<4x8x8xbf16, #tpu.memory_space<vmem>>, vector<1x8x8xbf16>
    %12 = vector.shape_cast %11 : vector<1x8x8xbf16> to vector<8x8xbf16>
    %cst = arith.constant dense<0.000000e+00> : vector<8x8xf32>
    %13 = tpu.matmul %10, %12, %cst {dimension_numbers = #tpu.dot_dimension_numbers<[1], [0], [0], [1], [0, 0, 1, 1], [], []>} : vector<8x8xbf16>, vector<8x8xbf16>, vector<8x8xf32> -> vector<8x8xf32>
    %14 = arith.addf %13, %9 : vector<8x8xf32>
    %cst_7 = arith.constant dense<0xFF800000> : vector<8xf32>
    %15 = vector.multi_reduction <maximumf>, %14, %cst_7 [1] : vector<8x8xf32> to vector<8xf32>
    %16 = vector.shape_cast %15 : vector<8xf32> to vector<8x1xf32>
    %17 = vector.broadcast %16 : vector<8x1xf32> to vector<8x8xf32>
    %18 = arith.subf %14, %17 : vector<8x8xf32>
    %19 = math.exp %18 : vector<8x8xf32>
    %cst_8 = arith.constant dense<0.000000e+00> : vector<8xf32>
    %20 = vector.multi_reduction <add>, %19, %cst_8 [1] : vector<8x8xf32> to vector<8xf32>
    %21 = vector.shape_cast %20 : vector<8xf32> to vector<8x1xf32>
    %22 = tpu.reciprocal %21 {approx = true} : vector<8x1xf32> -> vector<8x1xf32>
    %23 = vector.broadcast %22 : vector<8x1xf32> to vector<8x8xf32>
    %24 = arith.mulf %19, %23 : vector<8x8xf32>
    %25 = arith.truncf %24 : vector<8x8xf32> to vector<8x8xbf16>
    %c0_9 = arith.constant 0 : index
    %c0_10 = arith.constant 0 : index
    %c0_11 = arith.constant 0 : index
    %c0_12 = arith.constant 0 : index
    %26 = vector.load %arg15[%c0_9, %c0_10, %c0_11, %c0_12] : memref<1x4x8x8xbf16, #tpu.memory_space<vmem>>, vector<1x1x8x8xbf16>
    %27 = vector.shape_cast %26 : vector<1x1x8x8xbf16> to vector<8x8xbf16>
    %28 = vector.shape_cast %25 : vector<8x8xbf16> to vector<1x1x8x8xbf16>
    tpu.vector_store %arg15[%c0_9, %c0_10, %c0_11, %c0_12], %28 {strides = array<i32>} : memref<1x4x8x8xbf16, #tpu.memory_space<vmem>>, vector<1x1x8x8xbf16>,
    %c0_13 = arith.constant 0 : index
    %c0_14 = arith.constant 0 : index
    %29 = vector.load %arg16[%c0_13, %c0_14] : memref<8x32xbf16, #tpu.memory_space<vmem>>, vector<8x8xbf16>
    %30 = arith.truncf %24 : vector<8x8xf32> to vector<8x8xbf16>
    %cst_15 = arith.constant dense<0.000000e+00> : vector<8x8xf32>
    %31 = tpu.matmul %30, %29, %cst_15 {dimension_numbers = #tpu.dot_dimension_numbers<[1], [0], [0], [1], [0, 0, 1, 1], [], []>} : vector<8x8xbf16>, vector<8x8xbf16>, vector<8x8xf32> -> vector<8x8xf32>
    %32 = vector.extract_strided_slice %6 {offsets = [0, 8], sizes = [8, 8], strides = [1, 1]} : vector<8x32xbf16> to vector<8x8xbf16>
    %c1 = arith.constant 1 : index
    %c0_16 = arith.constant 0 : index
    %c0_17 = arith.constant 0 : index
    %33 = vector.load %arg17[%c1, %c0_16, %c0_17] : memref<4x8x8xbf16, #tpu.memory_space<vmem>>, vector<1x8x8xbf16>
    %34 = vector.shape_cast %33 : vector<1x8x8xbf16> to vector<8x8xbf16>
    %cst_18 = arith.constant dense<0.000000e+00> : vector<8x8xf32>
    %35 = tpu.matmul %32, %34, %cst_18 {dimension_numbers = #tpu.dot_dimension_numbers<[1], [0], [0], [1], [0, 0, 1, 1], [], []>} : vector<8x8xbf16>, vector<8x8xbf16>, vector<8x8xf32> -> vector<8x8xf32>
    %36 = arith.addf %35, %9 : vector<8x8xf32>
    %cst_19 = arith.constant dense<0xFF800000> : vector<8xf32>
    %37 = vector.multi_reduction <maximumf>, %36, %cst_19 [1] : vector<8x8xf32> to vector<8xf32>
    %38 = vector.shape_cast %37 : vector<8xf32> to vector<8x1xf32>
    %39 = vector.broadcast %38 : vector<8x1xf32> to vector<8x8xf32>
    %40 = arith.subf %36, %39 : vector<8x8xf32>
    %41 = math.exp %40 : vector<8x8xf32>
    %cst_20 = arith.constant dense<0.000000e+00> : vector<8xf32>
    %42 = vector.multi_reduction <add>, %41, %cst_20 [1] : vector<8x8xf32> to vector<8xf32>
    %43 = vector.shape_cast %42 : vector<8xf32> to vector<8x1xf32>
    %44 = tpu.reciprocal %43 {approx = true} : vector<8x1xf32> -> vector<8x1xf32>
    %45 = vector.broadcast %44 : vector<8x1xf32> to vector<8x8xf32>
    %46 = arith.mulf %41, %45 : vector<8x8xf32>
    %47 = arith.truncf %46 : vector<8x8xf32> to vector<8x8xbf16>
    %c0_21 = arith.constant 0 : index
    %c1_22 = arith.constant 1 : index
    %c0_23 = arith.constant 0 : index
    %c0_24 = arith.constant 0 : index
    %48 = vector.load %arg15[%c0_21, %c1_22, %c0_23, %c0_24] : memref<1x4x8x8xbf16, #tpu.memory_space<vmem>>, vector<1x1x8x8xbf16>
    %49 = vector.shape_cast %48 : vector<1x1x8x8xbf16> to vector<8x8xbf16>
    %50 = vector.shape_cast %47 : vector<8x8xbf16> to vector<1x1x8x8xbf16>
    tpu.vector_store %arg15[%c0_21, %c1_22, %c0_23, %c0_24], %50 {strides = array<i32>} : memref<1x4x8x8xbf16, #tpu.memory_space<vmem>>, vector<1x1x8x8xbf16>,
    %c0_25 = arith.constant 0 : index
    %c8 = arith.constant 8 : index
    %51 = vector.load %arg16[%c0_25, %c8] : memref<8x32xbf16, #tpu.memory_space<vmem>>, vector<8x8xbf16>
    %52 = arith.truncf %46 : vector<8x8xf32> to vector<8x8xbf16>
    %cst_26 = arith.constant dense<0.000000e+00> : vector<8x8xf32>
    %53 = tpu.matmul %52, %51, %cst_26 {dimension_numbers = #tpu.dot_dimension_numbers<[1], [0], [0], [1], [0, 0, 1, 1], [], []>} : vector<8x8xbf16>, vector<8x8xbf16>, vector<8x8xf32> -> vector<8x8xf32>
    %54 = vector.extract_strided_slice %6 {offsets = [0, 16], sizes = [8, 8], strides = [1, 1]} : vector<8x32xbf16> to vector<8x8xbf16>
    %c2 = arith.constant 2 : index
    %c0_27 = arith.constant 0 : index
    %c0_28 = arith.constant 0 : index
    %55 = vector.load %arg17[%c2, %c0_27, %c0_28] : memref<4x8x8xbf16, #tpu.memory_space<vmem>>, vector<1x8x8xbf16>
    %56 = vector.shape_cast %55 : vector<1x8x8xbf16> to vector<8x8xbf16>
    %cst_29 = arith.constant dense<0.000000e+00> : vector<8x8xf32>
    %57 = tpu.matmul %54, %56, %cst_29 {dimension_numbers = #tpu.dot_dimension_numbers<[1], [0], [0], [1], [0, 0, 1, 1], [], []>} : vector<8x8xbf16>, vector<8x8xbf16>, vector<8x8xf32> -> vector<8x8xf32>
    %58 = arith.addf %57, %9 : vector<8x8xf32>
    %cst_30 = arith.constant dense<0xFF800000> : vector<8xf32>
    %59 = vector.multi_reduction <maximumf>, %58, %cst_30 [1] : vector<8x8xf32> to vector<8xf32>
    %60 = vector.shape_cast %59 : vector<8xf32> to vector<8x1xf32>
    %61 = vector.broadcast %60 : vector<8x1xf32> to vector<8x8xf32>
    %62 = arith.subf %58, %61 : vector<8x8xf32>
    %63 = math.exp %62 : vector<8x8xf32>
    %cst_31 = arith.constant dense<0.000000e+00> : vector<8xf32>
    %64 = vector.multi_reduction <add>, %63, %cst_31 [1] : vector<8x8xf32> to vector<8xf32>
    %65 = vector.shape_cast %64 : vector<8xf32> to vector<8x1xf32>
    %66 = tpu.reciprocal %65 {approx = true} : vector<8x1xf32> -> vector<8x1xf32>
    %67 = vector.broadcast %66 : vector<8x1xf32> to vector<8x8xf32>
    %68 = arith.mulf %63, %67 : vector<8x8xf32>
    %69 = arith.truncf %68 : vector<8x8xf32> to vector<8x8xbf16>
    %c0_32 = arith.constant 0 : index
    %c2_33 = arith.constant 2 : index
    %c0_34 = arith.constant 0 : index
    %c0_35 = arith.constant 0 : index
    %70 = vector.load %arg15[%c0_32, %c2_33, %c0_34, %c0_35] : memref<1x4x8x8xbf16, #tpu.memory_space<vmem>>, vector<1x1x8x8xbf16>
    %71 = vector.shape_cast %70 : vector<1x1x8x8xbf16> to vector<8x8xbf16>
    %72 = vector.shape_cast %69 : vector<8x8xbf16> to vector<1x1x8x8xbf16>
    tpu.vector_store %arg15[%c0_32, %c2_33, %c0_34, %c0_35], %72 {strides = array<i32>} : memref<1x4x8x8xbf16, #tpu.memory_space<vmem>>, vector<1x1x8x8xbf16>,
    %c0_36 = arith.constant 0 : index
    %c16 = arith.constant 16 : index
    %73 = vector.load %arg16[%c0_36, %c16] : memref<8x32xbf16, #tpu.memory_space<vmem>>, vector<8x8xbf16>
    %74 = arith.truncf %68 : vector<8x8xf32> to vector<8x8xbf16>
    %cst_37 = arith.constant dense<0.000000e+00> : vector<8x8xf32>
    %75 = tpu.matmul %74, %73, %cst_37 {dimension_numbers = #tpu.dot_dimension_numbers<[1], [0], [0], [1], [0, 0, 1, 1], [], []>} : vector<8x8xbf16>, vector<8x8xbf16>, vector<8x8xf32> -> vector<8x8xf32>
    %76 = vector.extract_strided_slice %6 {offsets = [0, 24], sizes = [8, 8], strides = [1, 1]} : vector<8x32xbf16> to vector<8x8xbf16>
    %c3 = arith.constant 3 : index
    %c0_38 = arith.constant 0 : index
    %c0_39 = arith.constant 0 : index
    %77 = vector.load %arg17[%c3, %c0_38, %c0_39] : memref<4x8x8xbf16, #tpu.memory_space<vmem>>, vector<1x8x8xbf16>
    %78 = vector.shape_cast %77 : vector<1x8x8xbf16> to vector<8x8xbf16>
    %cst_40 = arith.constant dense<0.000000e+00> : vector<8x8xf32>
    %79 = tpu.matmul %76, %78, %cst_40 {dimension_numbers = #tpu.dot_dimension_numbers<[1], [0], [0], [1], [0, 0, 1, 1], [], []>} : vector<8x8xbf16>, vector<8x8xbf16>, vector<8x8xf32> -> vector<8x8xf32>
    %80 = arith.addf %79, %9 : vector<8x8xf32>
    %cst_41 = arith.constant dense<0xFF800000> : vector<8xf32>
    %81 = vector.multi_reduction <maximumf>, %80, %cst_41 [1] : vector<8x8xf32> to vector<8xf32>
    %82 = vector.shape_cast %81 : vector<8xf32> to vector<8x1xf32>
    %83 = vector.broadcast %82 : vector<8x1xf32> to vector<8x8xf32>
    %84 = arith.subf %80, %83 : vector<8x8xf32>
    %85 = math.exp %84 : vector<8x8xf32>
    %cst_42 = arith.constant dense<0.000000e+00> : vector<8xf32>
    %86 = vector.multi_reduction <add>, %85, %cst_42 [1] : vector<8x8xf32> to vector<8xf32>
    %87 = vector.shape_cast %86 : vector<8xf32> to vector<8x1xf32>
    %88 = tpu.reciprocal %87 {approx = true} : vector<8x1xf32> -> vector<8x1xf32>
    %89 = vector.broadcast %88 : vector<8x1xf32> to vector<8x8xf32>
    %90 = arith.mulf %85, %89 : vector<8x8xf32>
    %91 = arith.truncf %90 : vector<8x8xf32> to vector<8x8xbf16>
    %c0_43 = arith.constant 0 : index
    %c3_44 = arith.constant 3 : index
    %c0_45 = arith.constant 0 : index
    %c0_46 = arith.constant 0 : index
    %92 = vector.load %arg15[%c0_43, %c3_44, %c0_45, %c0_46] : memref<1x4x8x8xbf16, #tpu.memory_space<vmem>>, vector<1x1x8x8xbf16>
    %93 = vector.shape_cast %92 : vector<1x1x8x8xbf16> to vector<8x8xbf16>
    %94 = vector.shape_cast %91 : vector<8x8xbf16> to vector<1x1x8x8xbf16>
    tpu.vector_store %arg15[%c0_43, %c3_44, %c0_45, %c0_46], %94 {strides = array<i32>} : memref<1x4x8x8xbf16, #tpu.memory_space<vmem>>, vector<1x1x8x8xbf16>,
    %c0_47 = arith.constant 0 : index
    %c24 = arith.constant 24 : index
    %95 = vector.load %arg16[%c0_47, %c24] : memref<8x32xbf16, #tpu.memory_space<vmem>>, vector<8x8xbf16>
    %96 = arith.truncf %90 : vector<8x8xf32> to vector<8x8xbf16>
    %cst_48 = arith.constant dense<0.000000e+00> : vector<8x8xf32>
    %97 = tpu.matmul %96, %95, %cst_48 {dimension_numbers = #tpu.dot_dimension_numbers<[1], [0], [0], [1], [0, 0, 1, 1], [], []>} : vector<8x8xbf16>, vector<8x8xbf16>, vector<8x8xf32> -> vector<8x8xf32>
    %98 = tpu.concatenate %31, %53, %75, %97 in 1 : vector<8x8xf32>, vector<8x8xf32>, vector<8x8xf32>, vector<8x8xf32> -> vector<8x32xf32>
    %99 = arith.truncf %98 : vector<8x32xf32> to vector<8x32xbf16>
    %c0_49 = arith.constant 0 : index
    %c0_50 = arith.constant 0 : index
    %100 = vector.load %arg5[%c0_49, %c0_50] : memref<32x32xbf16, #tpu.memory_space<vmem>>, vector<32x32xbf16>
    %cst_51 = arith.constant dense<0.000000e+00> : vector<8x32xf32>
    %101 = tpu.matmul %99, %100, %cst_51 {dimension_numbers = #tpu.dot_dimension_numbers<[1], [0], [0], [1], [0, 0, 1, 1], [], []>} : vector<8x32xbf16>, vector<32x32xbf16>, vector<8x32xf32> -> vector<8x32xf32>
    %c0_52 = arith.constant 0 : index
    %102 = arith.index_cast %4 : i32 to index
    %c0_53 = arith.constant 0 : index
    %103 = vector.load %arg2[%c0_52, %102, %c0_53] : memref<1x8x32xf32, #tpu.memory_space<vmem>>, vector<1x8x32xf32>
    %104 = vector.shape_cast %103 : vector<1x8x32xf32> to vector<8x32xf32>
    %105 = arith.addf %104, %101 : vector<8x32xf32>
    %c0_54 = arith.constant 0 : index
    %c0_55 = arith.constant 0 : index
    %106 = vector.load %arg6[%c0_54, %c0_55] : memref<1x32xf32, #tpu.memory_space<vmem>>, vector<1x32xf32>
    %c0_56 = arith.constant 0 : index
    %c0_57 = arith.constant 0 : index
    %107 = vector.load %arg7[%c0_56, %c0_57] : memref<1x32xf32, #tpu.memory_space<vmem>>, vector<1x32xf32>
    %cst_58 = arith.constant dense<0.000000e+00> : vector<8xf32>
    %108 = vector.multi_reduction <add>, %105, %cst_58 [1] : vector<8x32xf32> to vector<8xf32>
    %109 = vector.shape_cast %108 : vector<8xf32> to vector<8x1xf32>
    %cst_59 = arith.constant 3.200000e+01 : f32
    %110 = vector.broadcast %cst_59 : f32 to vector<8x1xf32>
    %111 = arith.divf %109, %110 : vector<8x1xf32>
    %112 = vector.broadcast %111 : vector<8x1xf32> to vector<8x32xf32>
    %113 = arith.subf %105, %112 : vector<8x32xf32>
    %114 = arith.mulf %113, %113 : vector<8x32xf32>
    %cst_60 = arith.constant dense<0.000000e+00> : vector<8xf32>
    %115 = vector.multi_reduction <add>, %114, %cst_60 [1] : vector<8x32xf32> to vector<8xf32>
    %116 = vector.shape_cast %115 : vector<8xf32> to vector<8x1xf32>
    %cst_61 = arith.constant 3.200000e+01 : f32
    %117 = vector.broadcast %cst_61 : f32 to vector<8x1xf32>
    %118 = arith.divf %116, %117 : vector<8x1xf32>
    %cst_62 = arith.constant 9.99999974E-6 : f32
    %119 = vector.broadcast %cst_62 : f32 to vector<8x1xf32>
    %120 = arith.addf %118, %119 : vector<8x1xf32>
    %121 = math.rsqrt %120 : vector<8x1xf32>
    %122 = vector.broadcast %121 : vector<8x1xf32> to vector<8x32xf32>
    %123 = arith.mulf %113, %122 : vector<8x32xf32>
    %124 = vector.broadcast %106 : vector<1x32xf32> to vector<8x32xf32>
    %125 = arith.mulf %123, %124 : vector<8x32xf32>
    %126 = vector.broadcast %107 : vector<1x32xf32> to vector<8x32xf32>
    %127 = arith.addf %125, %126 : vector<8x32xf32>
    %128 = arith.truncf %127 : vector<8x32xf32> to vector<8x32xbf16>
    %c0_63 = arith.constant 0 : index
    %c0_64 = arith.constant 0 : index
    %129 = vector.load %arg8[%c0_63, %c0_64] : memref<32x64xbf16, #tpu.memory_space<vmem>>, vector<32x64xbf16>
    %cst_65 = arith.constant dense<0.000000e+00> : vector<8x64xf32>
    %130 = tpu.matmul %128, %129, %cst_65 {dimension_numbers = #tpu.dot_dimension_numbers<[1], [0], [0], [1], [0, 0, 1, 1], [], []>} : vector<8x32xbf16>, vector<32x64xbf16>, vector<8x64xf32> -> vector<8x64xf32>
    %c0_66 = arith.constant 0 : index
    %c0_67 = arith.constant 0 : index
    %131 = vector.load %arg9[%c0_66, %c0_67] : memref<1x64xf32, #tpu.memory_space<vmem>>, vector<1x64xf32>
    %132 = vector.broadcast %131 : vector<1x64xf32> to vector<8x64xf32>
    %133 = arith.addf %130, %132 : vector<8x64xf32>
    %cst_68 = arith.constant 0.000000e+00 : f32
    %134 = vector.broadcast %cst_68 : f32 to vector<8x64xf32>
    %135 = arith.maximumf %133, %134 : vector<8x64xf32>
    %136 = arith.truncf %135 : vector<8x64xf32> to vector<8x64xbf16>
    %c0_69 = arith.constant 0 : index
    %c0_70 = arith.constant 0 : index
    %137 = vector.load %arg10[%c0_69, %c0_70] : memref<64x32xbf16, #tpu.memory_space<vmem>>, vector<64x32xbf16>
    %cst_71 = arith.constant dense<0.000000e+00> : vector<8x32xf32>
    %138 = tpu.matmul %136, %137, %cst_71 {dimension_numbers = #tpu.dot_dimension_numbers<[1], [0], [0], [1], [0, 0, 1, 1], [], []>} : vector<8x64xbf16>, vector<64x32xbf16>, vector<8x32xf32> -> vector<8x32xf32>
    %c0_72 = arith.constant 0 : index
    %c0_73 = arith.constant 0 : index
    %139 = vector.load %arg11[%c0_72, %c0_73] : memref<1x32xf32, #tpu.memory_space<vmem>>, vector<1x32xf32>
    %140 = vector.broadcast %139 : vector<1x32xf32> to vector<8x32xf32>
    %141 = arith.addf %138, %140 : vector<8x32xf32>
    %142 = arith.addf %141, %127 : vector<8x32xf32>
    %c0_74 = arith.constant 0 : index
    %c0_75 = arith.constant 0 : index
    %143 = vector.load %arg12[%c0_74, %c0_75] : memref<1x32xf32, #tpu.memory_space<vmem>>, vector<1x32xf32>
    %c0_76 = arith.constant 0 : index
    %c0_77 = arith.constant 0 : index
    %144 = vector.load %arg13[%c0_76, %c0_77] : memref<1x32xf32, #tpu.memory_space<vmem>>, vector<1x32xf32>
    %cst_78 = arith.constant dense<0.000000e+00> : vector<8xf32>
    %145 = vector.multi_reduction <add>, %142, %cst_78 [1] : vector<8x32xf32> to vector<8xf32>
    %146 = vector.shape_cast %145 : vector<8xf32> to vector<8x1xf32>
    %cst_79 = arith.constant 3.200000e+01 : f32
    %147 = vector.broadcast %cst_79 : f32 to vector<8x1xf32>
    %148 = arith.divf %146, %147 : vector<8x1xf32>
    %149 = vector.broadcast %148 : vector<8x1xf32> to vector<8x32xf32>
    %150 = arith.subf %142, %149 : vector<8x32xf32>
    %151 = arith.mulf %150, %150 : vector<8x32xf32>
    %cst_80 = arith.constant dense<0.000000e+00> : vector<8xf32>
    %152 = vector.multi_reduction <add>, %151, %cst_80 [1] : vector<8x32xf32> to vector<8xf32>
    %153 = vector.shape_cast %152 : vector<8xf32> to vector<8x1xf32>
    %cst_81 = arith.constant 3.200000e+01 : f32
    %154 = vector.broadcast %cst_81 : f32 to vector<8x1xf32>
    %155 = arith.divf %153, %154 : vector<8x1xf32>
    %cst_82 = arith.constant 9.99999974E-6 : f32
    %156 = vector.broadcast %cst_82 : f32 to vector<8x1xf32>
    %157 = arith.addf %155, %156 : vector<8x1xf32>
    %158 = math.rsqrt %157 : vector<8x1xf32>
    %159 = vector.broadcast %158 : vector<8x1xf32> to vector<8x32xf32>
    %160 = arith.mulf %150, %159 : vector<8x32xf32>
    %161 = vector.broadcast %143 : vector<1x32xf32> to vector<8x32xf32>
    %162 = arith.mulf %160, %161 : vector<8x32xf32>
    %163 = vector.broadcast %144 : vector<1x32xf32> to vector<8x32xf32>
    %164 = arith.addf %162, %163 : vector<8x32xf32>
    %c0_83 = arith.constant 0 : index
    %c0_84 = arith.constant 0 : index
    %c0_85 = arith.constant 0 : index
    %165 = vector.load %arg14[%c0_83, %c0_84, %c0_85] : memref<1x8x32xf32, #tpu.memory_space<vmem>>, vector<1x8x32xf32>
    %166 = vector.shape_cast %165 : vector<1x8x32xf32> to vector<8x32xf32>
    %167 = vector.shape_cast %164 : vector<8x32xf32> to vector<1x8x32xf32>
    tpu.vector_store %arg14[%c0_83, %c0_84, %c0_85], %167 {strides = array<i32>} : memref<1x8x32xf32, #tpu.memory_space<vmem>>, vector<1x8x32xf32>,
    return
  }
  func.func @transform_0(%arg0: i32, %arg1: i32) -> (i32, i32, i32) {
    %c0_i32 = arith.constant 0 : i32
    %c0_i32_0 = arith.constant 0 : i32
    %c0_i32_1 = arith.constant 0 : i32
    return %arg0, %c0_i32, %c0_i32_0 : i32, i32, i32
  }
  func.func @transform_1(%arg0: i32, %arg1: i32) -> (i32, i32, i32) {
    %c0_i32 = arith.constant 0 : i32
    %c0_i32_0 = arith.constant 0 : i32
    return %arg0, %arg1, %c0_i32 : i32, i32, i32
  }
  func.func @transform_2(%arg0: i32, %arg1: i32) -> (i32, i32) {
    %c0_i32 = arith.constant 0 : i32
    %c0_i32_0 = arith.constant 0 : i32
    %c0_i32_1 = arith.constant 0 : i32
    return %c0_i32, %c0_i32_0 : i32, i32
  }
  func.func @transform_3(%arg0: i32, %arg1: i32) -> (i32, i32) {
    %c0_i32 = arith.constant 0 : i32
    %c0_i32_0 = arith.constant 0 : i32
    %c0_i32_1 = arith.constant 0 : i32
    return %c0_i32, %c0_i32_0 : i32, i32
  }
  func.func @transform_4(%arg0: i32, %arg1: i32) -> (i32, i32) {
    %c0_i32 = arith.constant 0 : i32
    %c0_i32_0 = arith.constant 0 : i32
    %c0_i32_1 = arith.constant 0 : i32
    return %c0_i32, %c0_i32_0 : i32, i32
  }
  func.func @transform_5(%arg0: i32, %arg1: i32) -> (i32, i32) {
    %c0_i32 = arith.constant 0 : i32
    %c0_i32_0 = arith.constant 0 : i32
    %c0_i32_1 = arith.constant 0 : i32
    return %c0_i32, %c0_i32_0 : i32, i32
  }
  func.func @transform_6(%arg0: i32, %arg1: i32) -> (i32, i32) {
    %c0_i32 = arith.constant 0 : i32
    %c0_i32_0 = arith.constant 0 : i32
    %c0_i32_1 = arith.constant 0 : i32
    return %c0_i32, %c0_i32_0 : i32, i32
  }
  func.func @transform_7(%arg0: i32, %arg1: i32) -> (i32, i32) {
    %c0_i32 = arith.constant 0 : i32
    %c0_i32_0 = arith.constant 0 : i32
    %c0_i32_1 = arith.constant 0 : i32
    return %c0_i32, %c0_i32_0 : i32, i32
  }
  func.func @transform_8(%arg0: i32, %arg1: i32) -> (i32, i32) {
    %c0_i32 = arith.constant 0 : i32
    %c0_i32_0 = arith.constant 0 : i32
    %c0_i32_1 = arith.constant 0 : i32
    return %c0_i32, %c0_i32_0 : i32, i32
  }
  func.func @transform_9(%arg0: i32, %arg1: i32) -> (i32, i32) {
    %c0_i32 = arith.constant 0 : i32
    %c0_i32_0 = arith.constant 0 : i32
    %c0_i32_1 = arith.constant 0 : i32
    return %c0_i32, %c0_i32_0 : i32, i32
  }
  func.func @transform_10(%arg0: i32, %arg1: i32) -> (i32, i32) {
    %c0_i32 = arith.constant 0 : i32
    %c0_i32_0 = arith.constant 0 : i32
    %c0_i32_1 = arith.constant 0 : i32
    return %c0_i32, %c0_i32_0 : i32, i32
  }
  func.func @transform_11(%arg0: i32, %arg1: i32) -> (i32, i32) {
    %c0_i32 = arith.constant 0 : i32
    %c0_i32_0 = arith.constant 0 : i32
    %c0_i32_1 = arith.constant 0 : i32
    return %c0_i32, %c0_i32_0 : i32, i32
  }
  func.func @transform_12(%arg0: i32, %arg1: i32) -> (i32, i32, i32) {
    %c0_i32 = arith.constant 0 : i32
    %c0_i32_0 = arith.constant 0 : i32
    return %arg0, %arg1, %c0_i32 : i32, i32, i32
  }
  func.func @transform_13(%arg0: i32, %arg1: i32) -> (i32, i32, i32, i32) {
    %c0_i32 = arith.constant 0 : i32
    %c0_i32_0 = arith.constant 0 : i32
    %c0_i32_1 = arith.constant 0 : i32
    return %arg0, %c0_i32, %arg1, %c0_i32_0 : i32, i32, i32, i32
  }
}

</mosaic_0001>

<bundles_post_ra>
// kernel: tpu_custom_call.1
= control target key start
LH: loop header
LB: loop body
LE: loop exit
PB: predicated region body
PF: predicated region fallthrough
CT: control target
= control target key end

     0   :  { %s2548_s0 = inlined_call_operand.vmem [shape: f32[2,8,32], index: 0, kind: input, shape index: {}]   ;;  %s2549_s1 = inlined_call_operand.hbm [shape: bf16[2,8,8], index: 1, kind: input, shape index: {}]   ;;  %s2550_s2 = inlined_call_operand.vmem [shape: bf16[32,32], index: 2, kind: input, shape index: {}]   ;;  %s2551_s3 = inlined_call_operand.vmem [shape: bf16[32,32], index: 3, kind: input, shape index: {}]   ;;  %s2552_s4 = inlined_call_operand.vmem [shape: f32[1,32], index: 4, kind: input, shape index: {}]   ;;  %s2553_s5 = inlined_call_operand.vmem [shape: f32[1,32], index: 5, kind: input, shape index: {}]   ;;  %s2554_s6 = inlined_call_operand.hbm [shape: bf16[32,64], index: 6, kind: input, shape index: {}]   ;;  %s2555_s7 = inlined_call_operand.vmem [shape: f32[1,64], index: 7, kind: input, shape index: {}]   ;;  %s2556_s8 = inlined_call_operand.vmem [shape: bf16[64,32], index: 8, kind: input, shape index: {}]   ;;  %s2557_s9 = inlined_call_operand.vmem [shape: f32[1,32], index: 9, kind: input, shape index: {}]   ;;  %s2558_s10 = inlined_call_operand.vmem [shape: f32[1,32], index: 10, kind: input, shape index: {}]   ;;  %s2559_s11 = inlined_call_operand.vmem [shape: f32[1,32], index: 11, kind: input, shape index: {}]   ;;  %s2560_s12 = inlined_call_operand.hbm [shape: f32[2,8,32], index: 12, kind: output, shape index: {0}]   ;;  %s2561_s13 = inlined_call_operand.hbm [shape: bf16[2,4,8,8], index: 13, kind: output, shape index: {1}]  }
   0x1   :  { %2571 = sst [smem:[#allocation19_spill]] %s2548_s0 }
   0x2   :  { %2572 = sst [smem:[#allocation20_spill]] %s2554_s6 }
   0x3   :  { %2573 = sst [smem:[#allocation21_spill]] %s2558_s10 }
   0x4   :  { %2574 = sst [smem:[#allocation22_spill]] %s2559_s11 }
   0x5   :  { %2575 = sst [smem:[#allocation23_spill]] %s2560_s12 }
   0x6   :  { %2576 = sst [smem:[#allocation24_spill]] %s2561_s13 }
   0x7   :  { %19 = vsyncpa [#allocation5], 0 }
   0x8   :  { %21 = vsyncpa [#allocation5 + $0x1], 0 }
   0x9   :  { %22 = vsyncpa [#allocation8], 0 }
   0xa   :  { %23 = vsyncpa [#allocation6], 0 }
   0xb   :  { %25 = vsyncpa [#allocation6 + $0x1], 0 }
   0xc   :  { %26 = vsyncpa [#allocation11], 0 }
   0xd   :  { %28 = vsyncpa [#allocation11 + $0x1], 0  ;;  %s2140_s25 = smov 0   ;;  %s2142_s26 = smov 0  }
   0xe   :  { %s2144_s27 = smov 0   ;;  %s2146_s28 = smov 0  }
   0xf   :  { %s2148_s29 = smov 0   ;;  %s2150_s30 = smov 0  }
  0x10 LB: > { %2577 = sst [smem:[#allocation16_spill]] %s2032_s25  ;;  %s1579_s14 = sadd.s32 4294967295, %s2052_s30   ;;  %s2052_s30 = sphi %s2150_s30, %s34_s30   ;;  %s2048_s29 = sphi %s2148_s29, %s2608_s29   ;;  %s2044_s28 = sphi %s2146_s28, %s2607_s28   ;;  %s2040_s27 = sphi %s2144_s27, %s2606_s27   ;;  %s2036_s26 = sphi %s2142_s26, %s2605_s26   ;;  %s2032_s25 = sphi %s2140_s25, %s2604_s25  }
  0x11   : > { %s1580_s15 = sadd.s32 4294967294, %s2052_s30   ;;  %p94_p0 = scmp.ne.s32.totalorder %s2036_s26, %s2032_s25 }
  0x12   : > { %p2174_p1 = scmp.eq.s32.totalorder %s1579_s14, 0  ;;  %p2178_p2 = scmp.eq.s32.totalorder %s1579_s14, 1 }
  0x13   : > { %p336_p3 = scmp.eq.s32.totalorder %s1580_s15, 1  ;;  %p1581_p5 = scmp.ge.s32.totalorder %s2052_s30, 1 }
  0x14   : > { %s2578_s16 = scalar_select %p2174_p1, 1, 0 }
  0x15   : > { %s2579_s17 = scalar_select %p2178_p2, 1, 0 }
  0x16   : > { %p2184_p4 = por %p2174_p1, %p94_p0  ;;  %p2189_p6 = por %p336_p3, %p94_p0 }
  0x17   : > { %p371_p7 = scmp.lt.s32.totalorder %s2052_s30, 3  ;;  %s2054_s21 = smov [#allocation7]  }
  0x18   : > { %s2580_s18 = scalar_select %p2184_p4, 1, 0 }
  0x19   : > { %s2581_s19 = scalar_select %p2189_p6, 1, 0 }
  0x1a   : > { %p2194_p8 = pnand %p1581_p5, %p371_p7  ;;  %s395_s22 = sshll.u32 %s2054_s21, 4  ;;  %s396_s22 = int_to_ptr.vmem [resolvable:$true] %s395_s22 }
  0x1b   : > { %2582 = sst [smem:[#allocation17_spill]] %s2581_s19  ;;  %s46_s24 = sadd.s32 1, %s2048_s29 }
  0x1c   : > { %s2583_s20 = scalar_select %p2194_p8, 1, 0 }
  0x1d   : > { %p1763_p9 = pneg %p2194_p8  ;;  %s2585_s6 = sld [smem:[#allocation20_spill]] }
  0x1f   : > { %p2203_p11 = pnand %p1763_p9, %p2174_p1 }
  0x21   : > { %p1878_p13 = pneg %p2203_p11 }
  0x23   : > { %s1876_s19 = scalar_lea.hbm %s2585_s6, 256 }
  0x24   : > { %p1877_p12 = scmp.ne.s32.totalorder %s2585_s6, %s1876_s19  ;;  %p1883_p5 = scmp.lt.u32.totalorder %s1876_s19, %s2585_s6 }
  0x26   : > { %p1879_p0 = pnand %p1878_p13, %p1877_p12 }
  0x28   : > { %p1880_p3 = pneg %p1879_p0 }
  0x2a   : > { %p1885_p7 = pnand %p1883_p5, %p1880_p3 }
  0x2c   : > { %1888 = shalt.err (!%p1885_p7)
}
  0x2d   : > { %s1889_s10 = scalar_lea.vmem %s396_s22, 256  ;;  %p1897_p1 = scmp.lt.s32.totalorder %s396_s22, %s396_s22 }
  0x2e   : > { %p1890_p9 = scmp.ne.s32.totalorder %s396_s22, %s1889_s10  ;;  %p1898_p4 = scmp.lt.s32.totalorder %s1889_s10, %s1889_s10 }
  0x30   : > { %p1892_p10 = pnand %p1890_p9, %p1878_p13  ;;  %p1899_p8 = por %p1898_p4, %p1897_p1 }
  0x32   : > { %p1893_p6 = pneg %p1892_p10 }
  0x34   : > { %p1900_p2 = pnand %p1899_p8, %p1893_p6 }
  0x36   : > { %1903 = shalt.err (!%p1900_p2)
}
  0x37   : > { %s2055_s12 = smov 64   ;;  %s2056_s11 = smov 4  }
  0x38   : > { %1766 = dma.hbm_to_vmem [thread:$0]  (!%p2203_p11), %s2585_s6, 256, %s396_s22, [#allocation8], %s2055_s12, %s2055_s12, %s2056_s11  }
  0x39   : > { %p48_p1 = scmp.ge.s32.totalorder %s46_s24, 2  ;;  %s81_s10 = sadd.s32 1, %s2040_s27 }
  0x3a   : > { %p88_p2 = scmp.ne.s32.totalorder %s2040_s27, %s2036_s26  ;;  %p89_p4 = scmp.eq.s32.totalorder %s2052_s30, 0 }
  0x3b   : > { %s2610_s24 = smov (%p48_p1, %s46_s24), 0  ;;  %p2588_p8 = scmp.ne.s32.totalorder %s2579_s17, 0 }
  0x3c   : > { %2586 = sst [smem:[#allocation18_spill]] %s2610_s24  ;;  %p2230_p6 = por %p89_p4, %p88_p2 }
  0x3d   : > { %p2236_p10 = por %p2588_p8, %p88_p2  ;;  %s76_s23 = ssub.s32 %s2048_s29, %s2610_s24 }
  0x3e   : > { %p1779_p12 = scmp.lt.s32.totalorder %s2052_s30, 2  ;;  %p79_p11 = scmp.eq.s32.totalorder %s76_s23, 0 }
  0x3f   : > { %s431_s22 = sand.u32 1, %s2040_s27   ;;  %s1585_s11 = sshll.u32 %s2048_s29, 6 }
  0x40   : > { %s1584_s21 = sshll.u32 %s431_s22, 2  ;;  %s2251_s6 = scalar_lea.hbm %s2549_s1, %s1585_s11 }
  0x41   : > { %s2245_s12 = scalar_select %p79_p11, %s2040_s27, %s81_s10  }
  0x42   : > { %s435_s17 = scalar_lea.vmem [#allocation4], %s1584_s21  ;;  %p2257_p13 = pnand %p1779_p12, %p2230_p6 }
  0x43   : > { %s443_s13 = sshll.u32 %s435_s17, 4  ;;  %s432_s10 = scalar_lea.sflag [#allocation5], %s431_s22  ;;  %s2253_s13 = int_to_ptr.vmem [resolvable:$true] %s443_s13 }
  0x44   : > { %s1904_s24 = scalar_lea.hbm %s2251_s6, 64  ;;  %p1906_p3 = pneg %p2257_p13 }
  0x45   : > { %p1905_p0 = scmp.ne.s32.totalorder %s2251_s6, %s1904_s24  ;;  %s1909_s25 = scalar_lea.hbm %s2549_s1, 128 }
  0x46   : > { %p1910_p9 = scmp.lt.u32.totalorder %s2251_s6, %s2549_s1  ;;  %p1911_p1 = scmp.lt.u32.totalorder %s1909_s25, %s1904_s24 }
  0x47   : > { %p1907_p5 = pnand %p1906_p3, %p1905_p0  ;;  %p1913_p4 = scmp.lt.u32.totalorder %s1904_s24, %s2251_s6 }
  0x48   : > { %p1912_p2 = por %p1911_p1, %p1910_p9 }
  0x49   : > { %p1908_p7 = pneg %p1907_p5 }
  0x4a   : > { %p1914_p6 = por %p1913_p4, %p1912_p2 }
  0x4c   : > { %p1915_p8 = pnand %p1914_p6, %p1908_p7 }
  0x4e   : > { %1918 = shalt.err (!%p1915_p8)
}
  0x4f   : > { %s1919_s22 = scalar_lea.vmem %s2253_s13, 64  ;;  %s2057_s17 = smov [#allocation4]  }
  0x50   : > { %p1920_p12 = scmp.ne.s32.totalorder %s2253_s13, %s1919_s22  ;;  %s1924_s21 = sshll.u32 %s2057_s17, 4  ;;  %s1925_s21 = int_to_ptr.vmem [resolvable:$false] %s1924_s21 }
  0x51   : > { %s1926_s11 = scalar_lea.vmem %s1925_s21, 128  ;;  %p1927_p5 = scmp.lt.s32.totalorder %s2253_s13, %s1925_s21 }
  0x52   : > { %p1922_p11 = pnand %p1920_p12, %p1906_p3  ;;  %p1928_p9 = scmp.lt.s32.totalorder %s1926_s11, %s1919_s22 }
  0x54   : > { %p1923_p0 = pneg %p1922_p11  ;;  %p1929_p1 = por %p1928_p9, %p1927_p5 }
  0x56   : > { %p1930_p2 = pnand %p1929_p1, %p1923_p0 }
  0x58   : > { %1933 = shalt.err (!%p1930_p2)
}
  0x59   : > { %1770 = dma.hbm_to_vmem [thread:$0]  (!%p2257_p13), %s2251_s6, 64, %s2253_s13, %s432_s10  }
  0x5a   : > { %p2591_p7 = scmp.ne.s32.totalorder %s2583_s20, 0 }
  0x5b   : > { %s2289_s24 = sand.u32 (!%p2591_p7), 1, %s2036_s26   ;;  %p2592_p3 = scmp.ne.s32.totalorder (!%p2591_p7), %s2580_s18, 0 }
  0x5c   : > { %452 = sbr.rel (%p2591_p7) target bundleno = 3178 (0xc6a), region = 68  ;;  %s1587_s25 = sshll.u32 (!%p2591_p7), %s2289_s24, 2 }
  0x5d   : > { %s455_s14 = scalar_lea.sflag (!%p2591_p7), [#allocation5], %s2289_s24  ;;  %s2293_s19 = scalar_lea.vmem (!%p2591_p7), [#allocation4], %s1587_s25 }
  0x63   : > { %2015 = dma.done.wait (%p2592_p3), %s455_s14, 64  }
  0x64   : > { %2017 = vsyncadd (%p2592_p3), %s455_s14, 4294967232  ;;  %p2593_p13 = scmp.ne.s32.totalorder %s2578_s16, 0 }
  0x66   : > { %2019 = dma.done.wait (%p2593_p13), [#allocation8], 256  }
  0x67   : > { %2021 = vsyncadd (%p2593_p13), [#allocation8], 4294967040  ;;  %p514_p4 = scmp.lt.s32.totalorder %s2044_s28, 1  ;;  %v2058_v0 = vmov 0.0   ;;  %vm2059_vm0 = vmmov 0   ;;  %s2594_s0 = sld [smem:[#allocation19_spill]] }
  0x68   : > { %1669 = vmatprep.subr.bf16.mxu0 %v2058_v0  ;;  %1673 = vmatprep.mubr.msk.bf16.mxu0 %vm2059_vm0, %v2058_v0  ;;  %v1843_v1 = vld [vmem:[%s2550_s2] sm:$0xff]   ;;  %v1844_v2 = vld [vmem:[%s2550_s2 + $0x8] sm:$0xff]   ;;  %vm541_vm1 = vcmask 261120   ;;  %vm586_vm2 = vcmask 257024   ;;  %vm623_vm3 = vcmask 60416   ;;  %vm652_vm4 = vcmask 1043456  }
  0x69   : > { %s515_s6 = scalar_select %p514_p4, %s2044_s28, 1  ;;  %1677 = vmatprep.subr.bf16.mxu1 %v2058_v0  ;;  %1679 = vmatprep.mubr.msk.bf16.mxu1 %vm2059_vm0, %v2058_v0  ;;  %vm648_vm5 = vcmask 64512   ;;  %v645_v24 = vld [vmem:[%s2293_s19] sm:$0xf]  ;;  %vm1121_vm6 = vcmask 130048   ;;  %vm1123_vm7 = vcmask 195584  }
  0x6a   : > { %1670 = vmatpush3.bf16.msra.mxu0 %v1843_v1  ;;  %v2341_v25 = vunpack.c.l.bf16 %v645_v24  ;;  %s2060_s21 = smov 120   ;;  %s2061_s11 = smov 112   ;;  %vm1327_vm8 = vcmask 523264  }
  0x6b   : > { %s1591_s13 = sshll.u32 %s515_s6, 3  ;;  %1671 = vmatprep.subr.bf16.mxu0 %v2058_v0  ;;  %s2062_s25 = smov 104  }
  0x6c   : > { %s1590_s14 = sshll.u32 %s2289_s24, 4  ;;  %s2064_s23 = smov 16  }
  0x6d   : > { %s517_s20 = scalar_lea.vmem %s2594_s0, %s1591_s13  ;;  %s2357_s19 = scalar_lea.vmem [#allocation10], %s1590_s14 }
  0x6e   : > { %v2320_v3 = vld [vmem:[%s517_s20] sm:$0xff]  ;;  %1672 = vmatpush3.bf16.msra.mxu0 %v1844_v2  ;;  %s2063_s20 = smov 8   ;;  %s2065_s10 = smov 24  }
  0x6f   : > { %v524_v4 = vpack.c.bf16 %v2320_v3, %v2320_v3  ;;  %1701 = vmatprep.subr.bf16.mxu0 %v2058_v0  ;;  %s2595_s13 = sld [smem:[#allocation24_spill]]  ;;  %s1408_s16 = scalar_lea.sflag [#allocation11], %s2289_s24 }
  0x71   : > { %1674 = vmatmul.mubr.msk.bf16.vlgmr.msra.gmra.mrb[0].mxu0 %vm541_vm1, %v524_v4 }
  0x72   : > { %1703 = vmatprep.mubr.msk.bf16.mxu0 %vm2059_vm0, %v2058_v0 }
 0x144   : > { %v579_v5 = vpop.f32.mrb[0].mxu0 }
 0x145   : > { %v585_v6 = vpack.c.bf16 %v579_v5, %v579_v5  ;;  %v1675_v7 = vpop.f32.mrb[1].mxu0  ;;  %v588_v8 = vmul.f32 0.35355338, %v579_v5 }
 0x146   : > { %v582_v9 = vpop.f32.mrb[2].mxu0 }
 0x147   : > { %587 = vst.msk [vmem:[#allocation2] sm:$0xf] %vm586_vm2, %v585_v6  ;;  %589 = vxpose.xlu0.b32.start.end [1/1] (short) (narrow) %v588_v8, 32  ;;  %v1676_v10 = vpop.f32.mrb[3].mxu0 }
 0x14e   : > { %v710_v17 = vld [vmem:[#allocation2] sm:$0xf] }
 0x14f   : > { %v644_v18 = vld [vmem:[#allocation2] sm:$0xf]  ;;  %v715_v19 = vsel %vm652_vm4, %v710_v17, 0 }
 0x150   : > { %v1599_v39 = vcombine.low %v644_v18, %v644_v18 }
 0x1c7   : > { %v605_v11 = vpop.trf.xlu0 }
 0x1cb   : > { %v606_v12 = vpop.trf.xlu0 }
 0x1cc   : > { %v621_v13 = vpack.c.bf16 %v606_v12, %v605_v11  ;;  %v1636_v14 = vpack.c.bf16 %v606_v12, %v606_v12 }
 0x1ce   : > { %624 = vst.msk [vmem:[#allocation3] sm:$0xf] %vm623_vm3, %v621_v13  ;;  %630 = vst.msk [vmem:[#allocation3 + $0x4] sm:$0xf] %vm623_vm3, %v1636_v14 }
 0x1cf   : > { %v607_v20 = vpop.trf.xlu0 }
 0x1d3   : > { %v608_v21 = vpop.trf.xlu0 }
 0x1d4   : > { %v622_v22 = vpack.c.bf16 %v608_v21, %v607_v20  ;;  %v1637_v23 = vpack.c.bf16 %v608_v21, %v608_v21 }
 0x1d5   : > { %v647_v15 = vld [vmem:[#allocation3] sm:$0xf]  ;;  %v758_v47 = vld [vmem:[#allocation3 + $0x4] sm:$0xf] }
 0x1d6   : > { %v654_v16 = vsel %vm652_vm4, %v647_v15, 0  ;;  %632 = vst.msk [vmem:[#allocation3 + $0x8] sm:$0xf] %vm623_vm3, %v622_v22  ;;  %638 = vst.msk [vmem:[#allocation3 + $0xc] sm:$0xf] %vm623_vm3, %v1637_v23  ;;  %v768_v50 = vsel %vm652_vm4, %v758_v47, 0 }
 0x1d7   : > { %1678 = vmatpush3.bf16.msra.mxu1 %v654_v16  ;;  %v1848_v47 = vld [vmem:[%s2551_s3] sm:$0xff]  }
 0x1d8   : > { %1683 = vmatprep.subr.bf16.mxu1 %v2058_v0 }
 0x1da   : > { %1680 = vmatmul.mubr.msk.bf16.vlgmr.msra.gmra.mrb[0].mxu1 %vm648_vm5, %v644_v18 }
 0x1db   : > { %1684 = vmatpush3.bf16.msra.mxu1 %v715_v19  ;;  %1685 = vmatprep.mubr.msk.bf16.mxu1 %vm2059_vm0, %v2058_v0 }
 0x1dc   : > { %1689 = vmatprep.subr.bf16.mxu1 %v2058_v0 }
 0x1dd   : > { %v877_v32 = vld [vmem:[#allocation3 + $0x8] sm:$0xf]  ;;  %v993_v42 = vld [vmem:[#allocation3 + $0xc] sm:$0xf] }
 0x1de   : > { %v884_v33 = vsel %vm652_vm4, %v877_v32, 0  ;;  %v1000_v44 = vsel %vm652_vm4, %v993_v42, 0 }
 0x1df   : > { %1702 = vmatpush3.bf16.msra.mxu0 %v884_v33 }
 0x1e0   : > { %1713 = vmatprep.subr.bf16.mxu0 %v2058_v0 }
 0x2ad   : > { %v690_v26 = vpop.f32.mrb[0].mxu1 }
 0x2ae   : > { %v691_v27 = vadd.f32 %v690_v26, %v2341_v25  ;;  %v1681_v28 = vpop.f32.mrb[1].mxu1  ;;  %v1845_v26 = vld [vmem:[#allocation2] ss:$0 sps:$4 sm:$0xff]  }
 0x2af   : > { %v693_v29 = vpop.f32.mrb[2].mxu1  ;;  %v1847_v28 = vld [vmem:[#allocation2] ss:$0 sps:$4 sm:$0xff]  }
 0x2b0   : > { %v1682_v30 = vpop.f32.mrb[3].mxu1  ;;  %v696_v31 = vsel %vm648_vm5, %v691_v27, -inf }
 0x2b1   : > { %697 = vmax.xlane.f32.xlu0 %v696_v31 }
 0x33e   : > { %v698_v34 = vpop.xlane.xlu0 %697 }
 0x33f   : > { %v699_v35 = vsub.f32 %v691_v27, %v698_v34  ;;  %v1846_v27 = vld [vmem:[#allocation2] ss:$0 sps:$4 sm:$0xff]  }
 0x341   : > { %v700_v36 = vmul.f32 1.442695, %v699_v35 }
 0x343   : > { %1856 = vpow2.f32 %v700_v36 }
 0x34d   : > { %v1857_v37 = vpop.eup %1856 }
 0x34e   : > { %v702_v38 = vsel %vm648_vm5, %v1857_v37, 0.0 }
 0x34f   : > { %703 = vadd.xlane.f32.xlu1 %v702_v38 }
 0x360   : > { %762 = vrot.lane.b32.xlu1 %v1599_v39, %s2060_s21 }
 0x364   : > { %878 = vrot.lane.b32.xlu1 %v1599_v39, %s2061_s11 }
 0x368   : > { %994 = vrot.lane.b32.xlu1 %v1599_v39, %s2062_s25 }
 0x3dc   : > { %v704_v40 = vpop.xlane.xlu1 %703 }
 0x3dd   : > { %1858 = vrcp.f32 %v704_v40 }
 0x3e0   : > { %v763_v41 = vpop.permute.xlu1 %762 }
 0x3e4   : > { %v879_v43 = vpop.permute.xlu1 %878 }
 0x3e5   : > { %1704 = vmatmul.mubr.msk.bf16.vlgmr.msra.gmra.mrb[4].mxu0 %vm648_vm5, %v879_v43 }
 0x3e6   : > { %1714 = vmatpush3.bf16.msra.mxu0 %v1000_v44  ;;  %1715 = vmatprep.mubr.msk.bf16.mxu0 %vm2059_vm0, %v2058_v0 }
 0x3e7   : > { %v1859_v45 = vpop.eup %1858  ;;  %1725 = vmatprep.subr.bf16.mxu0 %v2058_v0 }
 0x3e8   : > { %v706_v46 = vmul.f32 %v1859_v45, %v1857_v37  ;;  %v995_v49 = vpop.permute.xlu1 %994 }
 0x3ea   : > { %v707_v48 = vpack.c.bf16 %v706_v46, %v706_v46 }
 0x3ec   : > { %709 = vst.msk [vmem:[%s2357_s19] sm:$0xf] %vm623_vm3, %v707_v48  ;;  %1686 = vmatmul.mubr.msk.bf16.vlgmr.msra.gmra.mrb[4].mxu1 %vm648_vm5, %v707_v48  ;;  %v1849_v48 = vld [vmem:[%s2551_s3 + $0x8] sm:$0xff]  }
 0x3ed   : > { %1690 = vmatpush3.bf16.msra.mxu1 %v768_v50  ;;  %1716 = vmatmul.mubr.msk.bf16.vlgmr.msra.gmra.mrb[8].mxu0 %vm648_vm5, %v995_v49 }
 0x3ee   : > { %1691 = vmatprep.mubr.msk.bf16.mxu1 %vm2059_vm0, %v2058_v0  ;;  %1695 = vmatprep.subr.bf16.mxu1 %v2058_v0 }
 0x3ef   : > { %1729 = vmatprep.mubr.msk.bf16.mxu0 %vm2059_vm0, %v2058_v0  ;;  %1726 = vmatpush3.bf16.msra.mxu0 %v1848_v47 }
 0x3f0   : > { %1727 = vmatprep.subr.bf16.mxu0 %v2058_v0 }
 0x3f3   : > { %1728 = vmatpush3.bf16.msra.mxu0 %v1849_v48 }
 0x3f4   : > { %1692 = vmatmul.mubr.msk.bf16.vlgmr.msra.gmra.mrb[8].mxu1 %vm648_vm5, %v763_v41  ;;  %1741 = vmatprep.subr.bf16.mxu0 %v2058_v0 }
 0x3f5   : > { %1697 = vmatprep.mubr.msk.bf16.mxu1 %vm2059_vm0, %v2058_v0 }
 0x4b8   : > { %v920_v51 = vpop.f32.mrb[4].mxu0 }
 0x4b9   : > { %v921_v52 = vadd.f32 %v920_v51, %v2341_v25  ;;  %v1705_v53 = vpop.f32.mrb[5].mxu0 }
 0x4ba   : > { %v923_v54 = vpop.f32.mrb[6].mxu0 }
 0x4bb   : > { %v1706_v55 = vpop.f32.mrb[7].mxu0  ;;  %v926_v56 = vsel %vm648_vm5, %v921_v52, -inf }
 0x4bc   : > { %927 = vmax.xlane.f32.xlu0 %v926_v56 }
 0x4bf   : > { %v2374_v57 = vpop.f32.mrb[4].mxu1 }
 0x4c0   : > { %v1687_v58 = vpop.f32.mrb[5].mxu1  ;;  %v1036_v59 = vpop.f32.mrb[8].mxu0 }
 0x4c1   : > { %v1037_v60 = vadd.f32 %v1036_v59, %v2341_v25  ;;  %v754_v61 = vpop.f32.mrb[6].mxu1  ;;  %v1717_v62 = vpop.f32.mrb[9].mxu0 }
 0x4c2   : > { %v1688_v63 = vpop.f32.mrb[7].mxu1  ;;  %v1039_v1 = vpop.f32.mrb[10].mxu0 }
 0x4c3   : > { %v1718_v2 = vpop.f32.mrb[11].mxu0  ;;  %v1042_v4 = vsel %vm648_vm5, %v1037_v60, -inf }
 0x4c4   : > { %1043 = vmax.xlane.f32.xlu0 %v1042_v4 }
 0x4c7   : > { %v804_v5 = vpop.f32.mrb[8].mxu1 }
 0x4c8   : > { %v805_v6 = vadd.f32 %v804_v5, %v2341_v25  ;;  %v1693_v7 = vpop.f32.mrb[9].mxu1 }
 0x4c9   : > { %v807_v8 = vpop.f32.mrb[10].mxu1 }
 0x4ca   : > { %v1694_v9 = vpop.f32.mrb[11].mxu1  ;;  %v810_v10 = vsel %vm648_vm5, %v805_v6, -inf }
 0x4cb   : > { %811 = vmax.xlane.f32.xlu1 %v810_v10 }
 0x549   : > { %v928_v11 = vpop.xlane.xlu0 %927 }
 0x54a   : > { %v929_v12 = vsub.f32 %v921_v52, %v928_v11 }
 0x54c   : > { %v930_v13 = vmul.f32 1.442695, %v929_v12 }
 0x54e   : > { %1860 = vpow2.f32 %v930_v13 }
 0x551   : > { %v1044_v14 = vpop.xlane.xlu0 %1043 }
 0x552   : > { %v1045_v15 = vsub.f32 %v1037_v60, %v1044_v14 }
 0x554   : > { %v1046_v16 = vmul.f32 1.442695, %v1045_v15 }
 0x556   : > { %1862 = vpow2.f32 %v1046_v16 }
 0x558   : > { %v1861_v17 = vpop.eup %1860  ;;  %v812_v18 = vpop.xlane.xlu1 %811 }
 0x559   : > { %v813_v19 = vsub.f32 %v805_v6, %v812_v18  ;;  %v932_v20 = vsel %vm648_vm5, %v1861_v17, 0.0  ;;  %v1851_v18 = vld [vmem:[#allocation7 + $0x8] sm:$0xff]  }
 0x55a   : > { %933 = vadd.xlane.f32.xlu0 %v932_v20 }
 0x55b   : > { %v814_v21 = vmul.f32 1.442695, %v813_v19  ;;  %v1853_v19 = vld [vmem:[%s2556_s8 + $0x8] sm:$0xff]  }
 0x55d   : > { %1864 = vpow2.f32 %v814_v21 }
 0x560   : > { %v1863_v22 = vpop.eup %1862 }
 0x561   : > { %v1048_v23 = vsel %vm648_vm5, %v1863_v22, 0.0 }
 0x562   : > { %1049 = vadd.xlane.f32.xlu1 %v1048_v23 }
 0x567   : > { %v1865_v24 = vpop.eup %1864 }
 0x568   : > { %v816_v25 = vsel %vm648_vm5, %v1865_v24, 0.0 }
 0x569   : > { %817 = vadd.xlane.f32.xlu1 %v816_v25 }
 0x570   : > { %828 = vrot.lane.b32.xlu0 %v1845_v26, %s2060_s21  ;;  %v1616_v26 = vld [vmem:[%s2553_s5] ss:$0 sm:$0xff] }
 0x57a   : > { %944 = vrot.lane.b32.xlu1 %v1846_v27, %s2061_s11  ;;  %s1638_s11 = sshll.u32 %s2044_s28, 8 }
 0x57b   : > { %s2459_s18 = scalar_lea.hbm %s2595_s13, %s1638_s11 }
 0x57e   : > { %1060 = vrot.lane.b32.xlu1 %v1847_v28, %s2062_s25  ;;  %s1436_s25 = sshll.u32 %s2357_s19, 4  ;;  %s2461_s25 = int_to_ptr.vmem [resolvable:$true] %s1436_s25 }
 0x5e7   : > { %v934_v29 = vpop.xlane.xlu0 %933 }
 0x5e8   : > { %1866 = vrcp.f32 %v934_v29 }
 0x5eb   : > { %v829_v30 = vpop.permute.xlu0 %828 }
 0x5ec   : > { %v834_v31 = vsel %vm652_vm4, %v829_v30, 0  ;;  %v1854_v30 = vld [vmem:[%s2556_s8 + $0x10] sm:$0xff]  }
 0x5ed   : > { %1696 = vmatpush3.bf16.msra.mxu1 %v834_v31  ;;  %v1855_v31 = vld [vmem:[%s2556_s8 + $0x18] sm:$0xff]  }
 0x5ee   : > { %1707 = vmatprep.subr.bf16.mxu1 %v2058_v0 }
 0x5ef   : > { %v1050_v32 = vpop.xlane.xlu1 %1049 }
 0x5f0   : > { %1868 = vrcp.f32 %v1050_v32  ;;  %v1617_v32 = vld [vmem:[%s2555_s7] ss:$0 sm:$0xff] }
 0x5f2   : > { %v1867_v33 = vpop.eup %1866 }
 0x5f3   : > { %v936_v34 = vmul.f32 %v1867_v33, %v1861_v17  ;;  %v1850_v17 = vld [vmem:[#allocation7] sm:$0xff]  }
 0x5f5   : > { %v937_v35 = vpack.c.bf16 %v936_v34, %v936_v34 }
 0x5f6   : > { %v818_v36 = vpop.xlane.xlu1 %817 }
 0x5f7   : > { %1870 = vrcp.f32 %v818_v36  ;;  %1605 = vst.msk [vmem:[%s2357_s19 + $0x8] sm:$0xf] %vm623_vm3, %v937_v35 }
 0x5fa   : > { %v1869_v37 = vpop.eup %1868  ;;  %v945_v42 = vpop.permute.xlu1 %944 }
 0x5fb   : > { %v1052_v38 = vmul.f32 %v1869_v37, %v1863_v22  ;;  %v950_v44 = vsel %vm652_vm4, %v945_v42, 0 }
 0x5fd   : > { %v1053_v39 = vpack.c.bf16 %v1052_v38, %v1052_v38 }
 0x5fe   : > { %v1061_v45 = vpop.permute.xlu1 %1060 }
 0x5ff   : > { %1609 = vst.msk [vmem:[%s2357_s19 + $0xc] sm:$0xf] %vm623_vm3, %v1053_v39  ;;  %v1066_v46 = vsel %vm652_vm4, %v1061_v45, 0 }
 0x601   : > { %v1871_v40 = vpop.eup %1870 }
 0x602   : > { %v820_v41 = vmul.f32 %v1871_v40, %v1865_v24  ;;  %v1615_v24 = vld [vmem:[%s2552_s4] ss:$0 sm:$0xff] }
 0x604   : > { %v821_v43 = vpack.c.bf16 %v820_v41, %v820_v41 }
 0x606   : > { %1601 = vst.msk [vmem:[%s2357_s19 + $0x4] sm:$0xf] %vm623_vm3, %v821_v43  ;;  %1698 = vmatmul.mubr.msk.bf16.vlgmr.msra.gmra.mrb[12].mxu1 %vm648_vm5, %v821_v43 }
 0x607   : > { %1708 = vmatpush3.bf16.msra.mxu1 %v950_v44  ;;  %1709 = vmatprep.mubr.msk.bf16.mxu1 %vm2059_vm0, %v2058_v0 }
 0x608   : > { %1719 = vmatprep.subr.bf16.mxu1 %v2058_v0 }
 0x60e   : > { %1710 = vmatmul.mubr.msk.bf16.vlgmr.msra.gmra.mrb[16].mxu1 %vm648_vm5, %v937_v35 }
 0x60f   : > { %1720 = vmatpush3.bf16.msra.mxu1 %v1066_v46  ;;  %1721 = vmatprep.mubr.msk.bf16.mxu1 %vm2059_vm0, %v2058_v0 }
 0x610   : > { %1733 = vmatprep.subr.bf16.mxu1 %v2058_v0 }
 0x616   : > { %1722 = vmatmul.mubr.msk.bf16.vlgmr.msra.gmra.mrb[20].mxu1 %vm648_vm5, %v1053_v39 }
 0x617   : > { %1737 = vmatprep.mubr.msk.bf16.mxu1 %vm2059_vm0, %v2058_v0  ;;  %1734 = vmatpush3.bf16.msra.mxu1 %v1850_v17 }
 0x618   : > { %1735 = vmatprep.subr.bf16.mxu1 %v2058_v0 }
 0x61b   : > { %1736 = vmatpush3.bf16.msra.mxu1 %v1851_v18 }
 0x6d9   : > { %v870_v49 = vpop.f32.mrb[12].mxu1 }
 0x6da   : > { %1109 = vrot.lane.b32.xlu1 %v870_v49, %s2063_s20  ;;  %v1699_v50 = vpop.f32.mrb[13].mxu1  ;;  %s1934_s20 = scalar_lea.vmem %s2461_s25, 256 }
 0x6db   : > { %v873_v51 = vpop.f32.mrb[14].mxu1  ;;  %p1935_p6 = scmp.ne.s32.totalorder %s2461_s25, %s1934_s20 }
 0x6dc   : > { %v1700_v52 = vpop.f32.mrb[15].mxu1 }
 0x6dd   : > { %p1936_p8 = pnand %p1935_p6, %p2236_p10 }
 0x6df   : > { %p1937_p12 = pneg %p1936_p8 }
 0x6e1   : > { %v986_v53 = vpop.f32.mrb[16].mxu1 }
 0x6e2   : > { %1113 = vrot.lane.b32.xlu0 %v986_v53, %s2064_s23  ;;  %v1711_v54 = vpop.f32.mrb[17].mxu1  ;;  %s2066_s23 = smov [#allocation10]  }
 0x6e3   : > { %v989_v55 = vpop.f32.mrb[18].mxu1 }
 0x6e4   : > { %v1712_v56 = vpop.f32.mrb[19].mxu1 }
 0x6e9   : > { %v1102_v58 = vpop.f32.mrb[20].mxu1 }
 0x6ea   : > { %1117 = vrot.lane.b32.xlu1 %v1102_v58, %s2065_s10  ;;  %v1723_v59 = vpop.f32.mrb[21].mxu1  ;;  %s1938_s10 = sshll.u32 %s2066_s23, 4  ;;  %s1939_s10 = int_to_ptr.vmem [resolvable:$false] %s1938_s10 }
 0x6eb   : > { %v1105_v60 = vpop.f32.mrb[22].mxu1  ;;  %s1940_s19 = scalar_lea.vmem %s1939_s10, 512  ;;  %p1941_p11 = scmp.lt.s32.totalorder %s2461_s25, %s1939_s10 }
 0x6ec   : > { %v1724_v61 = vpop.f32.mrb[23].mxu1  ;;  %p1942_p0 = scmp.lt.s32.totalorder %s1940_s19, %s1934_s20 }
 0x6ee   : > { %p1943_p5 = por %p1942_p0, %p1941_p11 }
 0x6f0   : > { %p1944_p9 = pnand %p1943_p5, %p1937_p12 }
 0x74c   : > { %v1110_v62 = vpop.permute.xlu1 %1109 }
 0x74d   : > { %v1120_v1 = vsel %vm648_vm5, %v2374_v57, %v1110_v62 }
 0x754   : > { %v1114_v63 = vpop.permute.xlu0 %1113 }
 0x755   : > { %v1122_v2 = vsel %vm1121_vm6, %v1120_v1, %v1114_v63 }
 0x75c   : > { %v1118_v4 = vpop.permute.xlu1 %1117 }
 0x75d   : > { %v1124_v5 = vsel %vm1123_vm7, %v1122_v2, %v1118_v4 }
 0x75e   : > { %v1125_v6 = vpack.c.bf16 %v1124_v5, %v1124_v5 }
 0x760   : > { %1730 = vmatmul.mubr.msk.bf16.vlgmr.msra.gmra.mrb[12].mxu0 %vm541_vm1, %v1125_v6 }
 0x761   : > { %1749 = vmatprep.mubr.msk.bf16.mxu0 %vm2059_vm0, %v2058_v0 }
 0x833   : > { %v1180_v7 = vpop.f32.mrb[12].mxu0 }
 0x834   : > { %v1188_v8 = vadd.f32 %v1180_v7, %v2320_v3  ;;  %v1731_v9 = vpop.f32.mrb[13].mxu0  ;;  %v1852_v3 = vld [vmem:[%s2556_s8] sm:$0xff]  }
 0x835   : > { %v1183_v10 = vpop.f32.mrb[14].mxu0  ;;  %1742 = vmatpush3.bf16.msra.mxu0 %v1852_v3 }
 0x836   : > { %v1732_v11 = vpop.f32.mrb[15].mxu0  ;;  %v1191_v12 = vsel %vm541_vm1, %v1188_v8, 0.0  ;;  %1743 = vmatprep.subr.bf16.mxu0 %v2058_v0 }
 0x837   : > { %1192 = vadd.xlane.f32.xlu0 %v1191_v12 }
 0x839   : > { %1744 = vmatpush3.bf16.msra.mxu0 %v1853_v19 }
 0x83a   : > { %1745 = vmatprep.subr.bf16.mxu0 %v2058_v0 }
 0x83d   : > { %1746 = vmatpush3.bf16.msra.mxu0 %v1854_v30 }
 0x83e   : > { %1747 = vmatprep.subr.bf16.mxu0 %v2058_v0  ;;  %v1621_v0 = vld [vmem:[%s2557_s9] ss:$0 sm:$0xff] }
 0x841   : > { %1748 = vmatpush3.bf16.msra.mxu0 %v1855_v31 }
 0x8c4   : > { %v1193_v13 = vpop.xlane.xlu0 %1192 }
 0x8c5   : > { %v1195_v57 = vmul.f32 0.03125, %v1193_v13 }
 0x8c7   : > { %v1196_v14 = vsub.f32 %v1188_v8, %v1195_v57 }
 0x8c9   : > { %v1197_v15 = vmul.f32 %v1196_v14, %v1196_v14 }
 0x8cb   : > { %v1198_v16 = vsel %vm541_vm1, %v1197_v15, 0.0 }
 0x8cc   : > { %1199 = vadd.xlane.f32.xlu1 %v1198_v16 }
 0x959   : > { %v1200_v20 = vpop.xlane.xlu1 %1199 }
 0x95a   : > { %v1201_v21 = vmul.f32 0.03125, %v1200_v20 }
 0x95c   : > { %v1202_v22 = vadd.f32 1e-05, %v1201_v21 }
 0x95e   : > { %1872 = vrsqrt.f32 %v1202_v22 }
 0x968   : > { %v1873_v23 = vpop.eup %1872 }
 0x969   : > { %v1204_v25 = vmul.f32 %v1873_v23, %v1196_v14 }
 0x96b   : > { %v1211_v27 = vmul.f32 %v1615_v24, %v1204_v25 }
 0x96d   : > { %v1218_v28 = vadd.f32 %v1616_v26, %v1211_v27 }
 0x96f   : > { %v1219_v29 = vpack.c.bf16 %v1218_v28, %v1218_v28 }
 0x971   : > { %1738 = vmatmul.mubr.msk.bf16.vlgmr.msra.gmra.mrb[24].mxu1 %vm541_vm1, %v1219_v29 }
 0xa44   : > { %v1280_v33 = vpop.f32.mrb[24].mxu1 }
 0xa45   : > { %v1281_v34 = vadd.f32 %v1617_v32, %v1280_v33  ;;  %v1739_v35 = vpop.f32.mrb[25].mxu1 }
 0xa46   : > { %v1283_v36 = vpop.f32.mrb[26].mxu1 }
 0xa47   : > { %v1286_v37 = vmax.f32 %v1281_v34, 0.0  ;;  %v1740_v38 = vpop.f32.mrb[27].mxu1 }
 0xa49   : > { %v1287_v39 = vpack.c.bf16 %v1286_v37, %v1286_v37 }
 0xa4b   : > { %1750 = vmatmul.mubr.msk.bf16.vlgmr.msra.gmra.mrb[16].mxu0 %vm1327_vm8, %v1287_v39 }
 0xb1e   : > { %v1365_v40 = vpop.f32.mrb[16].mxu0 }
 0xb1f   : > { %v1366_v41 = vadd.f32 %v1621_v0, %v1365_v40  ;;  %v1751_v42 = vpop.f32.mrb[17].mxu0 }
 0xb20   : > { %v1368_v43 = vpop.f32.mrb[18].mxu0 }
 0xb21   : > { %v1752_v44 = vpop.f32.mrb[19].mxu0  ;;  %v1371_v45 = vadd.f32 %v1366_v41, %v1218_v28 }
 0xb23   : > { %v1374_v46 = vsel %vm541_vm1, %v1371_v45, 0.0 }
 0xb24   : > { %1375 = vadd.xlane.f32.xlu0 %v1374_v46 }
 0xbb1   : > { %v1376_v47 = vpop.xlane.xlu0 %1375 }
 0xbb2   : > { %v1377_v48 = vmul.f32 0.03125, %v1376_v47 }
 0xbb4   : > { %v1378_v49 = vsub.f32 %v1371_v45, %v1377_v48 }
 0xbb6   : > { %v1379_v50 = vmul.f32 %v1378_v49, %v1378_v49 }
 0xbb8   : > { %v1380_v51 = vsel %vm541_vm1, %v1379_v50, 0.0 }
 0xbb9   : > { %1381 = vadd.xlane.f32.xlu0 %v1380_v51 }
 0xbba   : > { %1947 = shalt.err (!%p1944_p9)
}
 0xbbb   : > { %s1948_s22 = scalar_lea.hbm %s2459_s18, 256  ;;  %s1952_s11 = scalar_lea.hbm %s2595_s13, 512 }
 0xbbc   : > { %p1949_p1 = scmp.ne.s32.totalorder %s2459_s18, %s1948_s22  ;;  %p1953_p3 = scmp.lt.u32.totalorder %s2459_s18, %s2595_s13 }
 0xbbd   : > { %p1954_p13 = scmp.lt.u32.totalorder %s1952_s11, %s1948_s22  ;;  %p1956_p6 = scmp.lt.u32.totalorder %s1948_s22, %s2459_s18 }
 0xbbe   : > { %p1950_p2 = pnand %p1949_p1, %p2236_p10 }
 0xbbf   : > { %p1955_p4 = por %p1954_p13, %p1953_p3 }
 0xbc0   : > { %p1951_p7 = pneg %p1950_p2 }
 0xbc1   : > { %p1957_p8 = por %p1956_p6, %p1955_p4 }
 0xbc3   : > { %p1958_p12 = pnand %p1957_p8, %p1951_p7 }
 0xbc5   : > { %1961 = shalt.err (!%p1958_p12)
}
 0xbc6   : > { %s2067_s20 = smov 64   ;;  %s2068_s23 = smov 4  }
 0xbc7   : > { %1760 = dma.vmem_to_hbm [thread:$0]  (%p2236_p10), %s2461_s25, 256, %s2459_s18, %s1408_s16, %s2067_s20, %s2067_s20, %s2068_s23  }
 0xbc8   : > { %s1589_s10 = sshll.u32 %s2289_s24, 3  ;;  %s2596_s17 = sld [smem:[#allocation21_spill]] }
 0xbc9   : > { %s2597_s14 = sld [smem:[#allocation22_spill]]  ;;  %s1631_s6 = sshll.u32 %s2044_s28, 7 }
 0xbca   : > { %s506_s0 = scalar_lea.vmem [#allocation9], %s1589_s10  ;;  %s2598_s20 = sld [smem:[#allocation23_spill]] }
 0xbcb   : > { %s1422_s25 = sshll.u32 %s506_s0, 4  ;;  %s1403_s19 = scalar_lea.sflag [#allocation6], %s2289_s24  ;;  %s2500_s25 = int_to_ptr.vmem [resolvable:$true] %s1422_s25 }
 0xbcc   : > { %s1962_s22 = scalar_lea.vmem %s2500_s25, 128  ;;  %s2069_s28 = smov [#allocation9]  }
 0xbcd   : > { %p1963_p11 = scmp.ne.s32.totalorder %s2500_s25, %s1962_s22  ;;  %s1966_s10 = sshll.u32 %s2069_s28, 4  ;;  %s1967_s10 = int_to_ptr.vmem [resolvable:$false] %s1966_s10 }
 0xbce   : > { %v1627_v56 = vld [vmem:[%s2596_s17] ss:$0 sm:$0xff]  ;;  %s1968_s17 = scalar_lea.vmem %s1967_s10, 256  ;;  %p1969_p9 = scmp.lt.s32.totalorder %s2500_s25, %s1967_s10 }
 0xbcf   : > { %v1628_v59 = vld [vmem:[%s2597_s14] ss:$0 sm:$0xff]  ;;  %p1964_p0 = pnand %p1963_p11, %p2236_p10  ;;  %p1970_p1 = scmp.lt.s32.totalorder %s1968_s17, %s1962_s22 }
 0xbd0   : > { %s2498_s23 = scalar_lea.hbm %s2598_s20, %s1631_s6 }
 0xbd1   : > { %p1965_p5 = pneg %p1964_p0  ;;  %p1971_p2 = por %p1970_p1, %p1969_p9 }
 0xbd3   : > { %p1972_p7 = pnand %p1971_p2, %p1965_p5 }
 0xc46   : > { %v1382_v52 = vpop.xlane.xlu0 %1381 }
 0xc47   : > { %v1383_v53 = vmul.f32 0.03125, %v1382_v52 }
 0xc49   : > { %v1384_v54 = vadd.f32 1e-05, %v1383_v53 }
 0xc4b   : > { %1874 = vrsqrt.f32 %v1384_v54 }
 0xc55   : > { %v1875_v55 = vpop.eup %1874 }
 0xc56   : > { %v1386_v58 = vmul.f32 %v1875_v55, %v1378_v49 }
 0xc58   : > { %v1393_v60 = vmul.f32 %v1627_v56, %v1386_v58 }
 0xc5a   : > { %v1400_v61 = vadd.f32 %v1628_v59, %v1393_v60 }
 0xc5c   : > { %1401 = vst.msk [vmem:[%s506_s0] sm:$0xff] %vm541_vm1, %v1400_v61 }
 0xc5d   : > { %1975 = shalt.err (!%p1972_p7)
}
 0xc5e   : > { %s1976_s0 = scalar_lea.hbm %s2498_s23, 128  ;;  %s1980_s11 = scalar_lea.hbm %s2598_s20, 256 }
 0xc5f   : > { %p1977_p3 = scmp.ne.s32.totalorder %s2498_s23, %s1976_s0  ;;  %p1981_p6 = scmp.lt.u32.totalorder %s2498_s23, %s2598_s20 }
 0xc60   : > { %p1982_p8 = scmp.lt.u32.totalorder %s1980_s11, %s1976_s0  ;;  %p1984_p11 = scmp.lt.u32.totalorder %s1976_s0, %s2498_s23 }
 0xc61   : > { %p1978_p13 = pnand %p1977_p3, %p2236_p10 }
 0xc62   : > { %p1983_p12 = por %p1982_p8, %p1981_p6 }
 0xc63   : > { %p1979_p4 = pneg %p1978_p13 }
 0xc64   : > { %p1985_p0 = por %p1984_p11, %p1983_p12 }
 0xc66   : > { %p1986_p5 = pnand %p1985_p0, %p1979_p4 }
 0xc68   : > { %1989 = shalt.err (!%p1986_p5)
}
 0xc69   : > { %1759 = dma.vmem_to_hbm [thread:$0]  (%p2236_p10), %s2500_s25, 128, %s2498_s23, %s1403_s19  }
 0xc6a PF: > { %s2599_s18 = sld [smem:[#allocation16_spill]]  ;;  %s2600_s16 = sld [smem:[#allocation17_spill]] }
 0xc6b   : > { %p2602_p1 = scmp.ge.s32.totalorder %s2052_s30, 2 }
 0xc70   : > { %s1451_s22 = sand.u32 1, %s2599_s18   ;;  %p2601_p9 = scmp.ne.s32.totalorder %s2600_s16, 0 }
 0xc71   : > { %s1452_s28 = scalar_lea.sflag [#allocation6], %s1451_s22 }
 0xc72   : > { %p1772_p2 = pnand %p2602_p1, %p2601_p9 }
 0xc74   : > { %2023 = dma.done.wait (!%p1772_p2), %s1452_s28, 128  }
 0xc75   : > { %2025 = vsyncadd (!%p1772_p2), %s1452_s28, 4294967168  ;;  %s1461_s10 = scalar_lea.sflag [#allocation11], %s1451_s22 }
 0xc76   : > { %2027 = dma.done.wait (!%p1772_p2), %s1461_s10, 256  }
 0xc77   : > { %2029 = vsyncadd (!%p1772_p2), %s1461_s10, 4294967040  ;;  %s34_s30 = sadd.s32 1, %s2052_s30   ;;  %s2603_s15 = sld [smem:[#allocation18_spill]] }
 0xc78   : > { %p31_p7 = scmp.ge.s32.totalorder %s34_s30, 4   ;;  %s2604_s25 = smov %s2036_s26 }
 0xc79   : > { %s2605_s26 = smov %s2040_s27  ;;  %s2606_s27 = smov %s2245_s12 }
 0xc7a   : > { %s2607_s28 = smov %s2048_s29  ;;  %33 = sbr.rel (!%p31_p7) target bundleno = 16 (0x10), region = 152 }
 0xc7d   : > { %s2608_s29 = smov %s2603_s15 }
 0xc81   :  { %1466 = vsyncpa [#allocation5], 1 }
 0xc82   :  { %1468 = vsyncpa [#allocation5 + $0x1], 1 }
 0xc83   :  { %1469 = vsyncpa [#allocation8], 1 }
 0xc84   :  { %1470 = vsyncpa [#allocation6], 1 }
 0xc85   :  { %1472 = vsyncpa [#allocation6 + $0x1], 1 }
 0xc86   :  { %1473 = vsyncpa [#allocation11], 1 }
 0xc87   :  { %1475 = vsyncpa [#allocation11 + $0x1], 1 }

// kernel: tpu_custom_call.1
= control target key start
LH: loop header
LB: loop body
LE: loop exit
PB: predicated region body
PF: predicated region fallthrough
CT: control target
= control target key end

     0   :  { %s2548_s0 = inlined_call_operand.vmem [shape: f32[2,8,32], index: 0, kind: input, shape index: {}]   ;;  %s2549_s1 = inlined_call_operand.hbm [shape: bf16[2,8,8], index: 1, kind: input, shape index: {}]   ;;  %s2550_s2 = inlined_call_operand.vmem [shape: bf16[32,32], index: 2, kind: input, shape index: {}]   ;;  %s2551_s3 = inlined_call_operand.vmem [shape: bf16[32,32], index: 3, kind: input, shape index: {}]   ;;  %s2552_s4 = inlined_call_operand.vmem [shape: f32[1,32], index: 4, kind: input, shape index: {}]   ;;  %s2553_s5 = inlined_call_operand.vmem [shape: f32[1,32], index: 5, kind: input, shape index: {}]   ;;  %s2554_s6 = inlined_call_operand.hbm [shape: bf16[32,64], index: 6, kind: input, shape index: {}]   ;;  %s2555_s7 = inlined_call_operand.vmem [shape: f32[1,64], index: 7, kind: input, shape index: {}]   ;;  %s2556_s8 = inlined_call_operand.vmem [shape: bf16[64,32], index: 8, kind: input, shape index: {}]   ;;  %s2557_s9 = inlined_call_operand.vmem [shape: f32[1,32], index: 9, kind: input, shape index: {}]   ;;  %s2558_s10 = inlined_call_operand.vmem [shape: f32[1,32], index: 10, kind: input, shape index: {}]   ;;  %s2559_s11 = inlined_call_operand.vmem [shape: f32[1,32], index: 11, kind: input, shape index: {}]   ;;  %s2560_s12 = inlined_call_operand.hbm [shape: f32[2,8,32], index: 12, kind: output, shape index: {0}]   ;;  %s2561_s13 = inlined_call_operand.hbm [shape: bf16[2,4,8,8], index: 13, kind: output, shape index: {1}]  }
   0x1   :  { %2571 = sst [smem:[#allocation19_spill]] %s2548_s0 }
   0x2   :  { %2572 = sst [smem:[#allocation20_spill]] %s2554_s6 }
   0x3   :  { %2573 = sst [smem:[#allocation21_spill]] %s2558_s10 }
   0x4   :  { %2574 = sst [smem:[#allocation22_spill]] %s2559_s11 }
   0x5   :  { %2575 = sst [smem:[#allocation23_spill]] %s2560_s12 }
   0x6   :  { %2576 = sst [smem:[#allocation24_spill]] %s2561_s13 }
   0x7   :  { %19 = vsyncpa [#allocation5], 0 }
   0x8   :  { %21 = vsyncpa [#allocation5 + $0x1], 0 }
   0x9   :  { %22 = vsyncpa [#allocation8], 0 }
   0xa   :  { %23 = vsyncpa [#allocation6], 0 }
   0xb   :  { %25 = vsyncpa [#allocation6 + $0x1], 0 }
   0xc   :  { %26 = vsyncpa [#allocation11], 0 }
   0xd   :  { %28 = vsyncpa [#allocation11 + $0x1], 0  ;;  %s2140_s25 = smov 0   ;;  %s2142_s26 = smov 0  }
   0xe   :  { %s2144_s27 = smov 0   ;;  %s2146_s28 = smov 0  }
   0xf   :  { %s2148_s29 = smov 0   ;;  %s2150_s30 = smov 0  }
  0x10 LB: > { %2577 = sst [smem:[#allocation16_spill]] %s2032_s25  ;;  %s1579_s14 = sadd.s32 4294967295, %s2052_s30   ;;  %s2052_s30 = sphi %s2150_s30, %s34_s30   ;;  %s2048_s29 = sphi %s2148_s29, %s2608_s29   ;;  %s2044_s28 = sphi %s2146_s28, %s2607_s28   ;;  %s2040_s27 = sphi %s2144_s27, %s2606_s27   ;;  %s2036_s26 = sphi %s2142_s26, %s2605_s26   ;;  %s2032_s25 = sphi %s2140_s25, %s2604_s25  }
  0x11   : > { %s1580_s15 = sadd.s32 4294967294, %s2052_s30   ;;  %p94_p0 = scmp.ne.s32.totalorder %s2036_s26, %s2032_s25 }
  0x12   : > { %p2174_p1 = scmp.eq.s32.totalorder %s1579_s14, 0  ;;  %p2178_p2 = scmp.eq.s32.totalorder %s1579_s14, 1 }
  0x13   : > { %p336_p3 = scmp.eq.s32.totalorder %s1580_s15, 1  ;;  %p1581_p5 = scmp.ge.s32.totalorder %s2052_s30, 1 }
  0x14   : > { %s2578_s16 = scalar_select %p2174_p1, 1, 0 }
  0x15   : > { %s2579_s17 = scalar_select %p2178_p2, 1, 0 }
  0x16   : > { %p2184_p4 = por %p2174_p1, %p94_p0  ;;  %p2189_p6 = por %p336_p3, %p94_p0 }
  0x17   : > { %p371_p7 = scmp.lt.s32.totalorder %s2052_s30, 3  ;;  %s2054_s21 = smov [#allocation7]  }
  0x18   : > { %s2580_s18 = scalar_select %p2184_p4, 1, 0 }
  0x19   : > { %s2581_s19 = scalar_select %p2189_p6, 1, 0 }
  0x1a   : > { %p2194_p8 = pnand %p1581_p5, %p371_p7  ;;  %s395_s22 = sshll.u32 %s2054_s21, 4  ;;  %s396_s22 = int_to_ptr.vmem [resolvable:$true] %s395_s22 }
  0x1b   : > { %2582 = sst [smem:[#allocation17_spill]] %s2581_s19  ;;  %s46_s24 = sadd.s32 1, %s2048_s29 }
  0x1c   : > { %s2583_s20 = scalar_select %p2194_p8, 1, 0 }
  0x1d   : > { %p1763_p9 = pneg %p2194_p8  ;;  %s2585_s6 = sld [smem:[#allocation20_spill]] }
  0x1f   : > { %p2203_p11 = pnand %p1763_p9, %p2174_p1 }
  0x21   : > { %p1878_p13 = pneg %p2203_p11 }
  0x23   : > { %s1876_s19 = scalar_lea.hbm %s2585_s6, 256 }
  0x24   : > { %p1877_p12 = scmp.ne.s32.totalorder %s2585_s6, %s1876_s19  ;;  %p1883_p5 = scmp.lt.u32.totalorder %s1876_s19, %s2585_s6 }
  0x26   : > { %p1879_p0 = pnand %p1878_p13, %p1877_p12 }
  0x28   : > { %p1880_p3 = pneg %p1879_p0 }
  0x2a   : > { %p1885_p7 = pnand %p1883_p5, %p1880_p3 }
  0x2c   : > { %1888 = shalt.err (!%p1885_p7)
}
  0x2d   : > { %s1889_s10 = scalar_lea.vmem %s396_s22, 256  ;;  %p1897_p1 = scmp.lt.s32.totalorder %s396_s22, %s396_s22 }
  0x2e   : > { %p1890_p9 = scmp.ne.s32.totalorder %s396_s22, %s1889_s10  ;;  %p1898_p4 = scmp.lt.s32.totalorder %s1889_s10, %s1889_s10 }
  0x30   : > { %p1892_p10 = pnand %p1890_p9, %p1878_p13  ;;  %p1899_p8 = por %p1898_p4, %p1897_p1 }
  0x32   : > { %p1893_p6 = pneg %p1892_p10 }
  0x34   : > { %p1900_p2 = pnand %p1899_p8, %p1893_p6 }
  0x36   : > { %1903 = shalt.err (!%p1900_p2)
}
  0x37   : > { %s2055_s12 = smov 64   ;;  %s2056_s11 = smov 4  }
  0x38   : > { %1766 = dma.hbm_to_vmem [thread:$0]  (!%p2203_p11), %s2585_s6, 256, %s396_s22, [#allocation8], %s2055_s12, %s2055_s12, %s2056_s11  }
  0x39   : > { %p48_p1 = scmp.ge.s32.totalorder %s46_s24, 2  ;;  %s81_s10 = sadd.s32 1, %s2040_s27 }
  0x3a   : > { %p88_p2 = scmp.ne.s32.totalorder %s2040_s27, %s2036_s26  ;;  %p89_p4 = scmp.eq.s32.totalorder %s2052_s30, 0 }
  0x3b   : > { %s2610_s24 = smov (%p48_p1, %s46_s24), 0  ;;  %p2588_p8 = scmp.ne.s32.totalorder %s2579_s17, 0 }
  0x3c   : > { %2586 = sst [smem:[#allocation18_spill]] %s2610_s24  ;;  %p2230_p6 = por %p89_p4, %p88_p2 }
  0x3d   : > { %p2236_p10 = por %p2588_p8, %p88_p2  ;;  %s76_s23 = ssub.s32 %s2048_s29, %s2610_s24 }
  0x3e   : > { %p1779_p12 = scmp.lt.s32.totalorder %s2052_s30, 2  ;;  %p79_p11 = scmp.eq.s32.totalorder %s76_s23, 0 }
  0x3f   : > { %s431_s22 = sand.u32 1, %s2040_s27   ;;  %s1585_s11 = sshll.u32 %s2048_s29, 6 }
  0x40   : > { %s1584_s21 = sshll.u32 %s431_s22, 2  ;;  %s2251_s6 = scalar_lea.hbm %s2549_s1, %s1585_s11 }
  0x41   : > { %s2245_s12 = scalar_select %p79_p11, %s2040_s27, %s81_s10  }
  0x42   : > { %s435_s17 = scalar_lea.vmem [#allocation4], %s1584_s21  ;;  %p2257_p13 = pnand %p1779_p12, %p2230_p6 }
  0x43   : > { %s443_s13 = sshll.u32 %s435_s17, 4  ;;  %s432_s10 = scalar_lea.sflag [#allocation5], %s431_s22  ;;  %s2253_s13 = int_to_ptr.vmem [resolvable:$true] %s443_s13 }
  0x44   : > { %s1904_s24 = scalar_lea.hbm %s2251_s6, 64  ;;  %p1906_p3 = pneg %p2257_p13 }
  0x45   : > { %p1905_p0 = scmp.ne.s32.totalorder %s2251_s6, %s1904_s24  ;;  %s1909_s25 = scalar_lea.hbm %s2549_s1, 128 }
  0x46   : > { %p1910_p9 = scmp.lt.u32.totalorder %s2251_s6, %s2549_s1  ;;  %p1911_p1 = scmp.lt.u32.totalorder %s1909_s25, %s1904_s24 }
  0x47   : > { %p1907_p5 = pnand %p1906_p3, %p1905_p0  ;;  %p1913_p4 = scmp.lt.u32.totalorder %s1904_s24, %s2251_s6 }
  0x48   : > { %p1912_p2 = por %p1911_p1, %p1910_p9 }
  0x49   : > { %p1908_p7 = pneg %p1907_p5 }
  0x4a   : > { %p1914_p6 = por %p1913_p4, %p1912_p2 }
  0x4c   : > { %p1915_p8 = pnand %p1914_p6, %p1908_p7 }
  0x4e   : > { %1918 = shalt.err (!%p1915_p8)
}
  0x4f   : > { %s1919_s22 = scalar_lea.vmem %s2253_s13, 64  ;;  %s2057_s17 = smov [#allocation4]  }
  0x50   : > { %p1920_p12 = scmp.ne.s32.totalorder %s2253_s13, %s1919_s22  ;;  %s1924_s21 = sshll.u32 %s2057_s17, 4  ;;  %s1925_s21 = int_to_ptr.vmem [resolvable:$false] %s1924_s21 }
  0x51   : > { %s1926_s11 = scalar_lea.vmem %s1925_s21, 128  ;;  %p1927_p5 = scmp.lt.s32.totalorder %s2253_s13, %s1925_s21 }
  0x52   : > { %p1922_p11 = pnand %p1920_p12, %p1906_p3  ;;  %p1928_p9 = scmp.lt.s32.totalorder %s1926_s11, %s1919_s22 }
  0x54   : > { %p1923_p0 = pneg %p1922_p11  ;;  %p1929_p1 = por %p1928_p9, %p1927_p5 }
  0x56   : > { %p1930_p2 = pnand %p1929_p1, %p1923_p0 }
  0x58   : > { %1933 = shalt.err (!%p1930_p2)
}
  0x59   : > { %1770 = dma.hbm_to_vmem [thread:$0]  (!%p2257_p13), %s2251_s6, 64, %s2253_s13, %s432_s10  }
  0x5a   : > { %p2591_p7 = scmp.ne.s32.totalorder %s2583_s20, 0 }
  0x5b   : > { %s2289_s24 = sand.u32 (!%p2591_p7), 1, %s2036_s26   ;;  %p2592_p3 = scmp.ne.s32.totalorder (!%p2591_p7), %s2580_s18, 0 }
  0x5c   : > { %452 = sbr.rel (%p2591_p7) target bundleno = 3178 (0xc6a), region = 68  ;;  %s1587_s25 = sshll.u32 (!%p2591_p7), %s2289_s24, 2 }
  0x5d   : > { %s455_s14 = scalar_lea.sflag (!%p2591_p7), [#allocation5], %s2289_s24  ;;  %s2293_s19 = scalar_lea.vmem (!%p2591_p7), [#allocation4], %s1587_s25 }
  0x63   : > { %2015 = dma.done.wait (%p2592_p3), %s455_s14, 64  }
  0x64   : > { %2017 = vsyncadd (%p2592_p3), %s455_s14, 4294967232  ;;  %p2593_p13 = scmp.ne.s32.totalorder %s2578_s16, 0 }
  0x66   : > { %2019 = dma.done.wait (%p2593_p13), [#allocation8], 256  }
  0x67   : > { %2021 = vsyncadd (%p2593_p13), [#allocation8], 4294967040  ;;  %p514_p4 = scmp.lt.s32.totalorder %s2044_s28, 1  ;;  %v2058_v0 = vmov 0.0   ;;  %vm2059_vm0 = vmmov 0   ;;  %s2594_s0 = sld [smem:[#allocation19_spill]] }
  0x68   : > { %1669 = vmatprep.subr.bf16.mxu0 %v2058_v0  ;;  %1673 = vmatprep.mubr.msk.bf16.mxu0 %vm2059_vm0, %v2058_v0  ;;  %v1843_v1 = vld [vmem:[%s2550_s2] sm:$0xff]   ;;  %v1844_v2 = vld [vmem:[%s2550_s2 + $0x8] sm:$0xff]   ;;  %vm541_vm1 = vcmask 261120   ;;  %vm586_vm2 = vcmask 257024   ;;  %vm623_vm3 = vcmask 60416   ;;  %vm652_vm4 = vcmask 1043456  }
  0x69   : > { %s515_s6 = scalar_select %p514_p4, %s2044_s28, 1  ;;  %1677 = vmatprep.subr.bf16.mxu1 %v2058_v0  ;;  %1679 = vmatprep.mubr.msk.bf16.mxu1 %vm2059_vm0, %v2058_v0  ;;  %vm648_vm5 = vcmask 64512   ;;  %v645_v24 = vld [vmem:[%s2293_s19] sm:$0xf]  ;;  %vm1121_vm6 = vcmask 130048   ;;  %vm1123_vm7 = vcmask 195584  }
  0x6a   : > { %1670 = vmatpush3.bf16.msra.mxu0 %v1843_v1  ;;  %v2341_v25 = vunpack.c.l.bf16 %v645_v24  ;;  %s2060_s21 = smov 120   ;;  %s2061_s11 = smov 112   ;;  %vm1327_vm8 = vcmask 523264  }
  0x6b   : > { %s1591_s13 = sshll.u32 %s515_s6, 3  ;;  %1671 = vmatprep.subr.bf16.mxu0 %v2058_v0  ;;  %s2062_s25 = smov 104  }
  0x6c   : > { %s1590_s14 = sshll.u32 %s2289_s24, 4  ;;  %s2064_s23 = smov 16  }
  0x6d   : > { %s517_s20 = scalar_lea.vmem %s2594_s0, %s1591_s13  ;;  %s2357_s19 = scalar_lea.vmem [#allocation10], %s1590_s14 }
  0x6e   : > { %v2320_v3 = vld [vmem:[%s517_s20] sm:$0xff]  ;;  %1672 = vmatpush3.bf16.msra.mxu0 %v1844_v2  ;;  %s2063_s20 = smov 8   ;;  %s2065_s10 = smov 24  }
  0x6f   : > { %v524_v4 = vpack.c.bf16 %v2320_v3, %v2320_v3  ;;  %1701 = vmatprep.subr.bf16.mxu0 %v2058_v0  ;;  %s2595_s13 = sld [smem:[#allocation24_spill]]  ;;  %s1408_s16 = scalar_lea.sflag [#allocation11], %s2289_s24 }
  0x71   : > { %1674 = vmatmul.mubr.msk.bf16.vlgmr.msra.gmra.mrb[0].mxu0 %vm541_vm1, %v524_v4 }
  0x72   : > { %1703 = vmatprep.mubr.msk.bf16.mxu0 %vm2059_vm0, %v2058_v0 }
 0x144   : > { %v579_v5 = vpop.f32.mrb[0].mxu0 }
 0x145   : > { %v585_v6 = vpack.c.bf16 %v579_v5, %v579_v5  ;;  %v1675_v7 = vpop.f32.mrb[1].mxu0  ;;  %v588_v8 = vmul.f32 0.35355338, %v579_v5 }
 0x146   : > { %v582_v9 = vpop.f32.mrb[2].mxu0 }
 0x147   : > { %587 = vst.msk [vmem:[#allocation2] sm:$0xf] %vm586_vm2, %v585_v6  ;;  %589 = vxpose.xlu0.b32.start.end [1/1] (short) (narrow) %v588_v8, 32  ;;  %v1676_v10 = vpop.f32.mrb[3].mxu0 }
 0x14e   : > { %v710_v17 = vld [vmem:[#allocation2] sm:$0xf] }
 0x14f   : > { %v644_v18 = vld [vmem:[#allocation2] sm:$0xf]  ;;  %v715_v19 = vsel %vm652_vm4, %v710_v17, 0 }
 0x150   : > { %v1599_v39 = vcombine.low %v644_v18, %v644_v18 }
 0x1c7   : > { %v605_v11 = vpop.trf.xlu0 }
 0x1cb   : > { %v606_v12 = vpop.trf.xlu0 }
 0x1cc   : > { %v621_v13 = vpack.c.bf16 %v606_v12, %v605_v11  ;;  %v1636_v14 = vpack.c.bf16 %v606_v12, %v606_v12 }
 0x1ce   : > { %624 = vst.msk [vmem:[#allocation3] sm:$0xf] %vm623_vm3, %v621_v13  ;;  %630 = vst.msk [vmem:[#allocation3 + $0x4] sm:$0xf] %vm623_vm3, %v1636_v14 }
 0x1cf   : > { %v607_v20 = vpop.trf.xlu0 }
 0x1d3   : > { %v608_v21 = vpop.trf.xlu0 }
 0x1d4   : > { %v622_v22 = vpack.c.bf16 %v608_v21, %v607_v20  ;;  %v1637_v23 = vpack.c.bf16 %v608_v21, %v608_v21 }
 0x1d5   : > { %v647_v15 = vld [vmem:[#allocation3] sm:$0xf]  ;;  %v758_v47 = vld [vmem:[#allocation3 + $0x4] sm:$0xf] }
 0x1d6   : > { %v654_v16 = vsel %vm652_vm4, %v647_v15, 0  ;;  %632 = vst.msk [vmem:[#allocation3 + $0x8] sm:$0xf] %vm623_vm3, %v622_v22  ;;  %638 = vst.msk [vmem:[#allocation3 + $0xc] sm:$0xf] %vm623_vm3, %v1637_v23  ;;  %v768_v50 = vsel %vm652_vm4, %v758_v47, 0 }
 0x1d7   : > { %1678 = vmatpush3.bf16.msra.mxu1 %v654_v16  ;;  %v1848_v47 = vld [vmem:[%s2551_s3] sm:$0xff]  }
 0x1d8   : > { %1683 = vmatprep.subr.bf16.mxu1 %v2058_v0 }
 0x1da   : > { %1680 = vmatmul.mubr.msk.bf16.vlgmr.msra.gmra.mrb[0].mxu1 %vm648_vm5, %v644_v18 }
 0x1db   : > { %1684 = vmatpush3.bf16.msra.mxu1 %v715_v19  ;;  %1685 = vmatprep.mubr.msk.bf16.mxu1 %vm2059_vm0, %v2058_v0 }
 0x1dc   : > { %1689 = vmatprep.subr.bf16.mxu1 %v2058_v0 }
 0x1dd   : > { %v877_v32 = vld [vmem:[#allocation3 + $0x8] sm:$0xf]  ;;  %v993_v42 = vld [vmem:[#allocation3 + $0xc] sm:$0xf] }
 0x1de   : > { %v884_v33 = vsel %vm652_vm4, %v877_v32, 0  ;;  %v1000_v44 = vsel %vm652_vm4, %v993_v42, 0 }
 0x1df   : > { %1702 = vmatpush3.bf16.msra.mxu0 %v884_v33 }
 0x1e0   : > { %1713 = vmatprep.subr.bf16.mxu0 %v2058_v0 }
 0x2ad   : > { %v690_v26 = vpop.f32.mrb[0].mxu1 }
 0x2ae   : > { %v691_v27 = vadd.f32 %v690_v26, %v2341_v25  ;;  %v1681_v28 = vpop.f32.mrb[1].mxu1  ;;  %v1845_v26 = vld [vmem:[#allocation2] ss:$0 sps:$4 sm:$0xff]  }
 0x2af   : > { %v693_v29 = vpop.f32.mrb[2].mxu1  ;;  %v1847_v28 = vld [vmem:[#allocation2] ss:$0 sps:$4 sm:$0xff]  }
 0x2b0   : > { %v1682_v30 = vpop.f32.mrb[3].mxu1  ;;  %v696_v31 = vsel %vm648_vm5, %v691_v27, -inf }
 0x2b1   : > { %697 = vmax.xlane.f32.xlu0 %v696_v31 }
 0x33e   : > { %v698_v34 = vpop.xlane.xlu0 %697 }
 0x33f   : > { %v699_v35 = vsub.f32 %v691_v27, %v698_v34  ;;  %v1846_v27 = vld [vmem:[#allocation2] ss:$0 sps:$4 sm:$0xff]  }
 0x341   : > { %v700_v36 = vmul.f32 1.442695, %v699_v35 }
 0x343   : > { %1856 = vpow2.f32 %v700_v36 }
 0x34d   : > { %v1857_v37 = vpop.eup %1856 }
 0x34e   : > { %v702_v38 = vsel %vm648_vm5, %v1857_v37, 0.0 }
 0x34f   : > { %703 = vadd.xlane.f32.xlu1 %v702_v38 }
 0x360   : > { %762 = vrot.lane.b32.xlu1 %v1599_v39, %s2060_s21 }
 0x364   : > { %878 = vrot.lane.b32.xlu1 %v1599_v39, %s2061_s11 }
 0x368   : > { %994 = vrot.lane.b32.xlu1 %v1599_v39, %s2062_s25 }
 0x3dc   : > { %v704_v40 = vpop.xlane.xlu1 %703 }
 0x3dd   : > { %1858 = vrcp.f32 %v704_v40 }
 0x3e0   : > { %v763_v41 = vpop.permute.xlu1 %762 }
 0x3e4   : > { %v879_v43 = vpop.permute.xlu1 %878 }
 0x3e5   : > { %1704 = vmatmul.mubr.msk.bf16.vlgmr.msra.gmra.mrb[4].mxu0 %vm648_vm5, %v879_v43 }
 0x3e6   : > { %1714 = vmatpush3.bf16.msra.mxu0 %v1000_v44  ;;  %1715 = vmatprep.mubr.msk.bf16.mxu0 %vm2059_vm0, %v2058_v0 }
 0x3e7   : > { %v1859_v45 = vpop.eup %1858  ;;  %1725 = vmatprep.subr.bf16.mxu0 %v2058_v0 }
 0x3e8   : > { %v706_v46 = vmul.f32 %v1859_v45, %v1857_v37  ;;  %v995_v49 = vpop.permute.xlu1 %994 }
 0x3ea   : > { %v707_v48 = vpack.c.bf16 %v706_v46, %v706_v46 }
 0x3ec   : > { %709 = vst.msk [vmem:[%s2357_s19] sm:$0xf] %vm623_vm3, %v707_v48  ;;  %1686 = vmatmul.mubr.msk.bf16.vlgmr.msra.gmra.mrb[4].mxu1 %vm648_vm5, %v707_v48  ;;  %v1849_v48 = vld [vmem:[%s2551_s3 + $0x8] sm:$0xff]  }
 0x3ed   : > { %1690 = vmatpush3.bf16.msra.mxu1 %v768_v50  ;;  %1716 = vmatmul.mubr.msk.bf16.vlgmr.msra.gmra.mrb[8].mxu0 %vm648_vm5, %v995_v49 }
 0x3ee   : > { %1691 = vmatprep.mubr.msk.bf16.mxu1 %vm2059_vm0, %v2058_v0  ;;  %1695 = vmatprep.subr.bf16.mxu1 %v2058_v0 }
 0x3ef   : > { %1729 = vmatprep.mubr.msk.bf16.mxu0 %vm2059_vm0, %v2058_v0  ;;  %1726 = vmatpush3.bf16.msra.mxu0 %v1848_v47 }
 0x3f0   : > { %1727 = vmatprep.subr.bf16.mxu0 %v2058_v0 }
 0x3f3   : > { %1728 = vmatpush3.bf16.msra.mxu0 %v1849_v48 }
 0x3f4   : > { %1692 = vmatmul.mubr.msk.bf16.vlgmr.msra.gmra.mrb[8].mxu1 %vm648_vm5, %v763_v41  ;;  %1741 = vmatprep.subr.bf16.mxu0 %v2058_v0 }
 0x3f5   : > { %1697 = vmatprep.mubr.msk.bf16.mxu1 %vm2059_vm0, %v2058_v0 }
 0x4b8   : > { %v920_v51 = vpop.f32.mrb[4].mxu0 }
 0x4b9   : > { %v921_v52 = vadd.f32 %v920_v51, %v2341_v25  ;;  %v1705_v53 = vpop.f32.mrb[5].mxu0 }
 0x4ba   : > { %v923_v54 = vpop.f32.mrb[6].mxu0 }
 0x4bb   : > { %v1706_v55 = vpop.f32.mrb[7].mxu0  ;;  %v926_v56 = vsel %vm648_vm5, %v921_v52, -inf }
 0x4bc   : > { %927 = vmax.xlane.f32.xlu0 %v926_v56 }
 0x4bf   : > { %v2374_v57 = vpop.f32.mrb[4].mxu1 }
 0x4c0   : > { %v1687_v58 = vpop.f32.mrb[5].mxu1  ;;  %v1036_v59 = vpop.f32.mrb[8].mxu0 }
 0x4c1   : > { %v1037_v60 = vadd.f32 %v1036_v59, %v2341_v25  ;;  %v754_v61 = vpop.f32.mrb[6].mxu1  ;;  %v1717_v62 = vpop.f32.mrb[9].mxu0 }
 0x4c2   : > { %v1688_v63 = vpop.f32.mrb[7].mxu1  ;;  %v1039_v1 = vpop.f32.mrb[10].mxu0 }
 0x4c3   : > { %v1718_v2 = vpop.f32.mrb[11].mxu0  ;;  %v1042_v4 = vsel %vm648_vm5, %v1037_v60, -inf }
 0x4c4   : > { %1043 = vmax.xlane.f32.xlu0 %v1042_v4 }
 0x4c7   : > { %v804_v5 = vpop.f32.mrb[8].mxu1 }
 0x4c8   : > { %v805_v6 = vadd.f32 %v804_v5, %v2341_v25  ;;  %v1693_v7 = vpop.f32.mrb[9].mxu1 }
 0x4c9   : > { %v807_v8 = vpop.f32.mrb[10].mxu1 }
 0x4ca   : > { %v1694_v9 = vpop.f32.mrb[11].mxu1  ;;  %v810_v10 = vsel %vm648_vm5, %v805_v6, -inf }
 0x4cb   : > { %811 = vmax.xlane.f32.xlu1 %v810_v10 }
 0x549   : > { %v928_v11 = vpop.xlane.xlu0 %927 }
 0x54a   : > { %v929_v12 = vsub.f32 %v921_v52, %v928_v11 }
 0x54c   : > { %v930_v13 = vmul.f32 1.442695, %v929_v12 }
 0x54e   : > { %1860 = vpow2.f32 %v930_v13 }
 0x551   : > { %v1044_v14 = vpop.xlane.xlu0 %1043 }
 0x552   : > { %v1045_v15 = vsub.f32 %v1037_v60, %v1044_v14 }
 0x554   : > { %v1046_v16 = vmul.f32 1.442695, %v1045_v15 }
 0x556   : > { %1862 = vpow2.f32 %v1046_v16 }
 0x558   : > { %v1861_v17 = vpop.eup %1860  ;;  %v812_v18 = vpop.xlane.xlu1 %811 }
 0x559   : > { %v813_v19 = vsub.f32 %v805_v6, %v812_v18  ;;  %v932_v20 = vsel %vm648_vm5, %v1861_v17, 0.0  ;;  %v1851_v18 = vld [vmem:[#allocation7 + $0x8] sm:$0xff]  }
 0x55a   : > { %933 = vadd.xlane.f32.xlu0 %v932_v20 }
 0x55b   : > { %v814_v21 = vmul.f32 1.442695, %v813_v19  ;;  %v1853_v19 = vld [vmem:[%s2556_s8 + $0x8] sm:$0xff]  }
 0x55d   : > { %1864 = vpow2.f32 %v814_v21 }
 0x560   : > { %v1863_v22 = vpop.eup %1862 }
 0x561   : > { %v1048_v23 = vsel %vm648_vm5, %v1863_v22, 0.0 }
 0x562   : > { %1049 = vadd.xlane.f32.xlu1 %v1048_v23 }
 0x567   : > { %v1865_v24 = vpop.eup %1864 }
 0x568   : > { %v816_v25 = vsel %vm648_vm5, %v1865_v24, 0.0 }
 0x569   : > { %817 = vadd.xlane.f32.xlu1 %v816_v25 }
 0x570   : > { %828 = vrot.lane.b32.xlu0 %v1845_v26, %s2060_s21  ;;  %v1616_v26 = vld [vmem:[%s2553_s5] ss:$0 sm:$0xff] }
 0x57a   : > { %944 = vrot.lane.b32.xlu1 %v1846_v27, %s2061_s11  ;;  %s1638_s11 = sshll.u32 %s2044_s28, 8 }
 0x57b   : > { %s2459_s18 = scalar_lea.hbm %s2595_s13, %s1638_s11 }
 0x57e   : > { %1060 = vrot.lane.b32.xlu1 %v1847_v28, %s2062_s25  ;;  %s1436_s25 = sshll.u32 %s2357_s19, 4  ;;  %s2461_s25 = int_to_ptr.vmem [resolvable:$true] %s1436_s25 }
 0x5e7   : > { %v934_v29 = vpop.xlane.xlu0 %933 }
 0x5e8   : > { %1866 = vrcp.f32 %v934_v29 }
 0x5eb   : > { %v829_v30 = vpop.permute.xlu0 %828 }
 0x5ec   : > { %v834_v31 = vsel %vm652_vm4, %v829_v30, 0  ;;  %v1854_v30 = vld [vmem:[%s2556_s8 + $0x10] sm:$0xff]  }
 0x5ed   : > { %1696 = vmatpush3.bf16.msra.mxu1 %v834_v31  ;;  %v1855_v31 = vld [vmem:[%s2556_s8 + $0x18] sm:$0xff]  }
 0x5ee   : > { %1707 = vmatprep.subr.bf16.mxu1 %v2058_v0 }
 0x5ef   : > { %v1050_v32 = vpop.xlane.xlu1 %1049 }
 0x5f0   : > { %1868 = vrcp.f32 %v1050_v32  ;;  %v1617_v32 = vld [vmem:[%s2555_s7] ss:$0 sm:$0xff] }
 0x5f2   : > { %v1867_v33 = vpop.eup %1866 }
 0x5f3   : > { %v936_v34 = vmul.f32 %v1867_v33, %v1861_v17  ;;  %v1850_v17 = vld [vmem:[#allocation7] sm:$0xff]  }
 0x5f5   : > { %v937_v35 = vpack.c.bf16 %v936_v34, %v936_v34 }
 0x5f6   : > { %v818_v36 = vpop.xlane.xlu1 %817 }
 0x5f7   : > { %1870 = vrcp.f32 %v818_v36  ;;  %1605 = vst.msk [vmem:[%s2357_s19 + $0x8] sm:$0xf] %vm623_vm3, %v937_v35 }
 0x5fa   : > { %v1869_v37 = vpop.eup %1868  ;;  %v945_v42 = vpop.permute.xlu1 %944 }
 0x5fb   : > { %v1052_v38 = vmul.f32 %v1869_v37, %v1863_v22  ;;  %v950_v44 = vsel %vm652_vm4, %v945_v42, 0 }
 0x5fd   : > { %v1053_v39 = vpack.c.bf16 %v1052_v38, %v1052_v38 }
 0x5fe   : > { %v1061_v45 = vpop.permute.xlu1 %1060 }
 0x5ff   : > { %1609 = vst.msk [vmem:[%s2357_s19 + $0xc] sm:$0xf] %vm623_vm3, %v1053_v39  ;;  %v1066_v46 = vsel %vm652_vm4, %v1061_v45, 0 }
 0x601   : > { %v1871_v40 = vpop.eup %1870 }
 0x602   : > { %v820_v41 = vmul.f32 %v1871_v40, %v1865_v24  ;;  %v1615_v24 = vld [vmem:[%s2552_s4] ss:$0 sm:$0xff] }
 0x604   : > { %v821_v43 = vpack.c.bf16 %v820_v41, %v820_v41 }
 0x606   : > { %1601 = vst.msk [vmem:[%s2357_s19 + $0x4] sm:$0xf] %vm623_vm3, %v821_v43  ;;  %1698 = vmatmul.mubr.msk.bf16.vlgmr.msra.gmra.mrb[12].mxu1 %vm648_vm5, %v821_v43 }
 0x607   : > { %1708 = vmatpush3.bf16.msra.mxu1 %v950_v44  ;;  %1709 = vmatprep.mubr.msk.bf16.mxu1 %vm2059_vm0, %v2058_v0 }
 0x608   : > { %1719 = vmatprep.subr.bf16.mxu1 %v2058_v0 }
 0x60e   : > { %1710 = vmatmul.mubr.msk.bf16.vlgmr.msra.gmra.mrb[16].mxu1 %vm648_vm5, %v937_v35 }
 0x60f   : > { %1720 = vmatpush3.bf16.msra.mxu1 %v1066_v46  ;;  %1721 = vmatprep.mubr.msk.bf16.mxu1 %vm2059_vm0, %v2058_v0 }
 0x610   : > { %1733 = vmatprep.subr.bf16.mxu1 %v2058_v0 }
 0x616   : > { %1722 = vmatmul.mubr.msk.bf16.vlgmr.msra.gmra.mrb[20].mxu1 %vm648_vm5, %v1053_v39 }
 0x617   : > { %1737 = vmatprep.mubr.msk.bf16.mxu1 %vm2059_vm0, %v2058_v0  ;;  %1734 = vmatpush3.bf16.msra.mxu1 %v1850_v17 }
 0x618   : > { %1735 = vmatprep.subr.bf16.mxu1 %v2058_v0 }
 0x61b   : > { %1736 = vmatpush3.bf16.msra.mxu1 %v1851_v18 }
 0x6d9   : > { %v870_v49 = vpop.f32.mrb[12].mxu1 }
 0x6da   : > { %1109 = vrot.lane.b32.xlu1 %v870_v49, %s2063_s20  ;;  %v1699_v50 = vpop.f32.mrb[13].mxu1  ;;  %s1934_s20 = scalar_lea.vmem %s2461_s25, 256 }
 0x6db   : > { %v873_v51 = vpop.f32.mrb[14].mxu1  ;;  %p1935_p6 = scmp.ne.s32.totalorder %s2461_s25, %s1934_s20 }
 0x6dc   : > { %v1700_v52 = vpop.f32.mrb[15].mxu1 }
 0x6dd   : > { %p1936_p8 = pnand %p1935_p6, %p2236_p10 }
 0x6df   : > { %p1937_p12 = pneg %p1936_p8 }
 0x6e1   : > { %v986_v53 = vpop.f32.mrb[16].mxu1 }
 0x6e2   : > { %1113 = vrot.lane.b32.xlu0 %v986_v53, %s2064_s23  ;;  %v1711_v54 = vpop.f32.mrb[17].mxu1  ;;  %s2066_s23 = smov [#allocation10]  }
 0x6e3   : > { %v989_v55 = vpop.f32.mrb[18].mxu1 }
 0x6e4   : > { %v1712_v56 = vpop.f32.mrb[19].mxu1 }
 0x6e9   : > { %v1102_v58 = vpop.f32.mrb[20].mxu1 }
 0x6ea   : > { %1117 = vrot.lane.b32.xlu1 %v1102_v58, %s2065_s10  ;;  %v1723_v59 = vpop.f32.mrb[21].mxu1  ;;  %s1938_s10 = sshll.u32 %s2066_s23, 4  ;;  %s1939_s10 = int_to_ptr.vmem [resolvable:$false] %s1938_s10 }
 0x6eb   : > { %v1105_v60 = vpop.f32.mrb[22].mxu1  ;;  %s1940_s19 = scalar_lea.vmem %s1939_s10, 512  ;;  %p1941_p11 = scmp.lt.s32.totalorder %s2461_s25, %s1939_s10 }
 0x6ec   : > { %v1724_v61 = vpop.f32.mrb[23].mxu1  ;;  %p1942_p0 = scmp.lt.s32.totalorder %s1940_s19, %s1934_s20 }
 0x6ee   : > { %p1943_p5 = por %p1942_p0, %p1941_p11 }
 0x6f0   : > { %p1944_p9 = pnand %p1943_p5, %p1937_p12 }
 0x74c   : > { %v1110_v62 = vpop.permute.xlu1 %1109 }
 0x74d   : > { %v1120_v1 = vsel %vm648_vm5, %v2374_v57, %v1110_v62 }
 0x754   : > { %v1114_v63 = vpop.permute.xlu0 %1113 }
 0x755   : > { %v1122_v2 = vsel %vm1121_vm6, %v1120_v1, %v1114_v63 }
 0x75c   : > { %v1118_v4 = vpop.permute.xlu1 %1117 }
 0x75d   : > { %v1124_v5 = vsel %vm1123_vm7, %v1122_v2, %v1118_v4 }
 0x75e   : > { %v1125_v6 = vpack.c.bf16 %v1124_v5, %v1124_v5 }
 0x760   : > { %1730 = vmatmul.mubr.msk.bf16.vlgmr.msra.gmra.mrb[12].mxu0 %vm541_vm1, %v1125_v6 }
 0x761   : > { %1749 = vmatprep.mubr.msk.bf16.mxu0 %vm2059_vm0, %v2058_v0 }
 0x833   : > { %v1180_v7 = vpop.f32.mrb[12].mxu0 }
 0x834   : > { %v1188_v8 = vadd.f32 %v1180_v7, %v2320_v3  ;;  %v1731_v9 = vpop.f32.mrb[13].mxu0  ;;  %v1852_v3 = vld [vmem:[%s2556_s8] sm:$0xff]  }
 0x835   : > { %v1183_v10 = vpop.f32.mrb[14].mxu0  ;;  %1742 = vmatpush3.bf16.msra.mxu0 %v1852_v3 }
 0x836   : > { %v1732_v11 = vpop.f32.mrb[15].mxu0  ;;  %v1191_v12 = vsel %vm541_vm1, %v1188_v8, 0.0  ;;  %1743 = vmatprep.subr.bf16.mxu0 %v2058_v0 }
 0x837   : > { %1192 = vadd.xlane.f32.xlu0 %v1191_v12 }
 0x839   : > { %1744 = vmatpush3.bf16.msra.mxu0 %v1853_v19 }
 0x83a   : > { %1745 = vmatprep.subr.bf16.mxu0 %v2058_v0 }
 0x83d   : > { %1746 = vmatpush3.bf16.msra.mxu0 %v1854_v30 }
 0x83e   : > { %1747 = vmatprep.subr.bf16.mxu0 %v2058_v0  ;;  %v1621_v0 = vld [vmem:[%s2557_s9] ss:$0 sm:$0xff] }
 0x841   : > { %1748 = vmatpush3.bf16.msra.mxu0 %v1855_v31 }
 0x8c4   : > { %v1193_v13 = vpop.xlane.xlu0 %1192 }
 0x8c5   : > { %v1195_v57 = vmul.f32 0.03125, %v1193_v13 }
 0x8c7   : > { %v1196_v14 = vsub.f32 %v1188_v8, %v1195_v57 }
 0x8c9   : > { %v1197_v15 = vmul.f32 %v1196_v14, %v1196_v14 }
 0x8cb   : > { %v1198_v16 = vsel %vm541_vm1, %v1197_v15, 0.0 }
 0x8cc   : > { %1199 = vadd.xlane.f32.xlu1 %v1198_v16 }
 0x959   : > { %v1200_v20 = vpop.xlane.xlu1 %1199 }
 0x95a   : > { %v1201_v21 = vmul.f32 0.03125, %v1200_v20 }
 0x95c   : > { %v1202_v22 = vadd.f32 1e-05, %v1201_v21 }
 0x95e   : > { %1872 = vrsqrt.f32 %v1202_v22 }
 0x968   : > { %v1873_v23 = vpop.eup %1872 }
 0x969   : > { %v1204_v25 = vmul.f32 %v1873_v23, %v1196_v14 }
 0x96b   : > { %v1211_v27 = vmul.f32 %v1615_v24, %v1204_v25 }
 0x96d   : > { %v1218_v28 = vadd.f32 %v1616_v26, %v1211_v27 }
 0x96f   : > { %v1219_v29 = vpack.c.bf16 %v1218_v28, %v1218_v28 }
 0x971   : > { %1738 = vmatmul.mubr.msk.bf16.vlgmr.msra.gmra.mrb[24].mxu1 %vm541_vm1, %v1219_v29 }
 0xa44   : > { %v1280_v33 = vpop.f32.mrb[24].mxu1 }
 0xa45   : > { %v1281_v34 = vadd.f32 %v1617_v32, %v1280_v33  ;;  %v1739_v35 = vpop.f32.mrb[25].mxu1 }
 0xa46   : > { %v1283_v36 = vpop.f32.mrb[26].mxu1 }
 0xa47   : > { %v1286_v37 = vmax.f32 %v1281_v34, 0.0  ;;  %v1740_v38 = vpop.f32.mrb[27].mxu1 }
 0xa49   : > { %v1287_v39 = vpack.c.bf16 %v1286_v37, %v1286_v37 }
 0xa4b   : > { %1750 = vmatmul.mubr.msk.bf16.vlgmr.msra.gmra.mrb[16].mxu0 %vm1327_vm8, %v1287_v39 }
 0xb1e   : > { %v1365_v40 = vpop.f32.mrb[16].mxu0 }
 0xb1f   : > { %v1366_v41 = vadd.f32 %v1621_v0, %v1365_v40  ;;  %v1751_v42 = vpop.f32.mrb[17].mxu0 }
 0xb20   : > { %v1368_v43 = vpop.f32.mrb[18].mxu0 }
 0xb21   : > { %v1752_v44 = vpop.f32.mrb[19].mxu0  ;;  %v1371_v45 = vadd.f32 %v1366_v41, %v1218_v28 }
 0xb23   : > { %v1374_v46 = vsel %vm541_vm1, %v1371_v45, 0.0 }
 0xb24   : > { %1375 = vadd.xlane.f32.xlu0 %v1374_v46 }
 0xbb1   : > { %v1376_v47 = vpop.xlane.xlu0 %1375 }
 0xbb2   : > { %v1377_v48 = vmul.f32 0.03125, %v1376_v47 }
 0xbb4   : > { %v1378_v49 = vsub.f32 %v1371_v45, %v1377_v48 }
 0xbb6   : > { %v1379_v50 = vmul.f32 %v1378_v49, %v1378_v49 }
 0xbb8   : > { %v1380_v51 = vsel %vm541_vm1, %v1379_v50, 0.0 }
 0xbb9   : > { %1381 = vadd.xlane.f32.xlu0 %v1380_v51 }
 0xbba   : > { %1947 = shalt.err (!%p1944_p9)
}
 0xbbb   : > { %s1948_s22 = scalar_lea.hbm %s2459_s18, 256  ;;  %s1952_s11 = scalar_lea.hbm %s2595_s13, 512 }
 0xbbc   : > { %p1949_p1 = scmp.ne.s32.totalorder %s2459_s18, %s1948_s22  ;;  %p1953_p3 = scmp.lt.u32.totalorder %s2459_s18, %s2595_s13 }
 0xbbd   : > { %p1954_p13 = scmp.lt.u32.totalorder %s1952_s11, %s1948_s22  ;;  %p1956_p6 = scmp.lt.u32.totalorder %s1948_s22, %s2459_s18 }
 0xbbe   : > { %p1950_p2 = pnand %p1949_p1, %p2236_p10 }
 0xbbf   : > { %p1955_p4 = por %p1954_p13, %p1953_p3 }
 0xbc0   : > { %p1951_p7 = pneg %p1950_p2 }
 0xbc1   : > { %p1957_p8 = por %p1956_p6, %p1955_p4 }
 0xbc3   : > { %p1958_p12 = pnand %p1957_p8, %p1951_p7 }
 0xbc5   : > { %1961 = shalt.err (!%p1958_p12)
}
 0xbc6   : > { %s2067_s20 = smov 64   ;;  %s2068_s23 = smov 4  }
 0xbc7   : > { %1760 = dma.vmem_to_hbm [thread:$0]  (%p2236_p10), %s2461_s25, 256, %s2459_s18, %s1408_s16, %s2067_s20, %s2067_s20, %s2068_s23  }
 0xbc8   : > { %s1589_s10 = sshll.u32 %s2289_s24, 3  ;;  %s2596_s17 = sld [smem:[#allocation21_spill]] }
 0xbc9   : > { %s2597_s14 = sld [smem:[#allocation22_spill]]  ;;  %s1631_s6 = sshll.u32 %s2044_s28, 7 }
 0xbca   : > { %s506_s0 = scalar_lea.vmem [#allocation9], %s1589_s10  ;;  %s2598_s20 = sld [smem:[#allocation23_spill]] }
 0xbcb   : > { %s1422_s25 = sshll.u32 %s506_s0, 4  ;;  %s1403_s19 = scalar_lea.sflag [#allocation6], %s2289_s24  ;;  %s2500_s25 = int_to_ptr.vmem [resolvable:$true] %s1422_s25 }
 0xbcc   : > { %s1962_s22 = scalar_lea.vmem %s2500_s25, 128  ;;  %s2069_s28 = smov [#allocation9]  }
 0xbcd   : > { %p1963_p11 = scmp.ne.s32.totalorder %s2500_s25, %s1962_s22  ;;  %s1966_s10 = sshll.u32 %s2069_s28, 4  ;;  %s1967_s10 = int_to_ptr.vmem [resolvable:$false] %s1966_s10 }
 0xbce   : > { %v1627_v56 = vld [vmem:[%s2596_s17] ss:$0 sm:$0xff]  ;;  %s1968_s17 = scalar_lea.vmem %s1967_s10, 256  ;;  %p1969_p9 = scmp.lt.s32.totalorder %s2500_s25, %s1967_s10 }
 0xbcf   : > { %v1628_v59 = vld [vmem:[%s2597_s14] ss:$0 sm:$0xff]  ;;  %p1964_p0 = pnand %p1963_p11, %p2236_p10  ;;  %p1970_p1 = scmp.lt.s32.totalorder %s1968_s17, %s1962_s22 }
 0xbd0   : > { %s2498_s23 = scalar_lea.hbm %s2598_s20, %s1631_s6 }
 0xbd1   : > { %p1965_p5 = pneg %p1964_p0  ;;  %p1971_p2 = por %p1970_p1, %p1969_p9 }
 0xbd3   : > { %p1972_p7 = pnand %p1971_p2, %p1965_p5 }
 0xc46   : > { %v1382_v52 = vpop.xlane.xlu0 %1381 }
 0xc47   : > { %v1383_v53 = vmul.f32 0.03125, %v1382_v52 }
 0xc49   : > { %v1384_v54 = vadd.f32 1e-05, %v1383_v53 }
 0xc4b   : > { %1874 = vrsqrt.f32 %v1384_v54 }
 0xc55   : > { %v1875_v55 = vpop.eup %1874 }
 0xc56   : > { %v1386_v58 = vmul.f32 %v1875_v55, %v1378_v49 }
 0xc58   : > { %v1393_v60 = vmul.f32 %v1627_v56, %v1386_v58 }
 0xc5a   : > { %v1400_v61 = vadd.f32 %v1628_v59, %v1393_v60 }
 0xc5c   : > { %1401 = vst.msk [vmem:[%s506_s0] sm:$0xff] %vm541_vm1, %v1400_v61 }
 0xc5d   : > { %1975 = shalt.err (!%p1972_p7)
}
 0xc5e   : > { %s1976_s0 = scalar_lea.hbm %s2498_s23, 128  ;;  %s1980_s11 = scalar_lea.hbm %s2598_s20, 256 }
 0xc5f   : > { %p1977_p3 = scmp.ne.s32.totalorder %s2498_s23, %s1976_s0  ;;  %p1981_p6 = scmp.lt.u32.totalorder %s2498_s23, %s2598_s20 }
 0xc60   : > { %p1982_p8 = scmp.lt.u32.totalorder %s1980_s11, %s1976_s0  ;;  %p1984_p11 = scmp.lt.u32.totalorder %s1976_s0, %s2498_s23 }
 0xc61   : > { %p1978_p13 = pnand %p1977_p3, %p2236_p10 }
 0xc62   : > { %p1983_p12 = por %p1982_p8, %p1981_p6 }
 0xc63   : > { %p1979_p4 = pneg %p1978_p13 }
 0xc64   : > { %p1985_p0 = por %p1984_p11, %p1983_p12 }
 0xc66   : > { %p1986_p5 = pnand %p1985_p0, %p1979_p4 }
 0xc68   : > { %1989 = shalt.err (!%p1986_p5)
}
 0xc69   : > { %1759 = dma.vmem_to_hbm [thread:$0]  (%p2236_p10), %s2500_s25, 128, %s2498_s23, %s1403_s19  }
 0xc6a PF: > { %s2599_s18 = sld [smem:[#allocation16_spill]]  ;;  %s2600_s16 = sld [smem:[#allocation17_spill]] }
 0xc6b   : > { %p2602_p1 = scmp.ge.s32.totalorder %s2052_s30, 2 }
 0xc70   : > { %s1451_s22 = sand.u32 1, %s2599_s18   ;;  %p2601_p9 = scmp.ne.s32.totalorder %s2600_s16, 0 }
 0xc71   : > { %s1452_s28 = scalar_lea.sflag [#allocation6], %s1451_s22 }
 0xc72   : > { %p1772_p2 = pnand %p2602_p1, %p2601_p9 }
 0xc74   : > { %2023 = dma.done.wait (!%p1772_p2), %s1452_s28, 128  }
 0xc75   : > { %2025 = vsyncadd (!%p1772_p2), %s1452_s28, 4294967168  ;;  %s1461_s10 = scalar_lea.sflag [#allocation11], %s1451_s22 }
 0xc76   : > { %2027 = dma.done.wait (!%p1772_p2), %s1461_s10, 256  }
 0xc77   : > { %2029 = vsyncadd (!%p1772_p2), %s1461_s10, 4294967040  ;;  %s34_s30 = sadd.s32 1, %s2052_s30   ;;  %s2603_s15 = sld [smem:[#allocation18_spill]] }
 0xc78   : > { %p31_p7 = scmp.ge.s32.totalorder %s34_s30, 4   ;;  %s2604_s25 = smov %s2036_s26 }
 0xc79   : > { %s2605_s26 = smov %s2040_s27  ;;  %s2606_s27 = smov %s2245_s12 }
 0xc7a   : > { %s2607_s28 = smov %s2048_s29  ;;  %33 = sbr.rel (!%p31_p7) target bundleno = 16 (0x10), region = 152 }
 0xc7d   : > { %s2608_s29 = smov %s2603_s15 }
 0xc81   :  { %1466 = vsyncpa [#allocation5], 1 }
 0xc82   :  { %1468 = vsyncpa [#allocation5 + $0x1], 1 }
 0xc83   :  { %1469 = vsyncpa [#allocation8], 1 }
 0xc84   :  { %1470 = vsyncpa [#allocation6], 1 }
 0xc85   :  { %1472 = vsyncpa [#allocation6 + $0x1], 1 }
 0xc86   :  { %1473 = vsyncpa [#allocation11], 1 }
 0xc87   :  { %1475 = vsyncpa [#allocation11 + $0x1], 1 }

</bundles_post_ra>
